<compile_context>
chip_gen: v6e
topology: v6e:2x2x1
jax: 0.10.0
libtpu: 0.0.40
codegen_flags: <defaults>
</compile_context>

<pallas_src>
import functools

import jax
import jax.numpy as jnp
from jax.experimental import pallas as pl
from jax.experimental.pallas import tpu as pltpu


# ---------------------------------------------------------------------------
# In-kernel helpers (traced into the kernel body).
# ---------------------------------------------------------------------------
def _layer_norm(x, gamma, beta, eps):
    mu = jnp.mean(x, axis=-1, keepdims=True)
    xc = x - mu
    var = jnp.mean(xc * xc, axis=-1, keepdims=True)
    return xc * jax.lax.rsqrt(var + eps) * gamma + beta


def _mha_core(q, k, v, mask, wo, bo, attn_w_ref, ctx_scratch, num_heads, head_dim):
    """q: (T,E) (already scaled), k/v: (S,E), mask: (T,S) additive.

    Writes softmax probs for head h into attn_w_ref[0, h] and the per-head
    context into a lane slice of ctx_scratch (no concatenate), then does a
    single (T,E)@(E,E) output projection.
    """
    for h in range(num_heads):                       # static unrolled loop
        sl = slice(h * head_dim, (h + 1) * head_dim)
        qh = q[:, sl]                                # (T, D)
        kh = k[:, sl]                                # (S, D)
        vh = v[:, sl]                                # (S, D)

        s = jnp.dot(qh, kh.T, preferred_element_type=jnp.float32) + mask   # (T, S)
        s = s - jnp.max(s, axis=-1, keepdims=True)
        e = jnp.exp(s)
        denom = jnp.sum(e, axis=-1, keepdims=True)
        p = e * pl.reciprocal(denom, approx=True)    # EUP, not VPU divide

        attn_w_ref[0, h] = p.astype(attn_w_ref.dtype)
        ctx_scratch[:, sl] = jnp.dot(p, vh, preferred_element_type=jnp.float32)

    ctx = ctx_scratch[...]                           # (T, E)
    return jnp.dot(ctx, wo, preferred_element_type=jnp.float32) + bo


# ---------------------------------------------------------------------------
# Fused DecoderLayer kernel (one batch element per grid step).
# ---------------------------------------------------------------------------
def _decoder_layer_kernel(
    # inputs
    x_ref, enc_ref, smask_ref, cmask_ref,
    wqkv_s_ref, bqkv_s_ref, wo_s_ref, bo_s_ref, g_sa_ref, be_sa_ref,
    wq_c_ref, bq_c_ref, wkv_c_ref, bkv_c_ref, wo_c_ref, bo_c_ref,
    g_ca_ref, be_ca_ref,
    w1_ref, b1_ref, w2_ref, b2_ref, g_f_ref, be_f_ref,
    # outputs
    out_ref, self_w_ref, cross_w_ref,
    # scratch
    ctx_scratch,
    *, num_heads, head_dim, eps):

    E = num_heads * head_dim
    x = x_ref[0]                                     # (T, E)
    enc = enc_ref[0]                                 # (S, E)

    # ---- self-attention (fused QKV projection; Q pre-scaled on host) ----
    qkv = (jnp.dot(x, wqkv_s_ref[...], preferred_element_type=jnp.float32)
           + bqkv_s_ref[...])                        # (T, 3E)
    q = qkv[:, :E]
    k = qkv[:, E:2 * E]
    v = qkv[:, 2 * E:3 * E]
    sa_out = _mha_core(q, k, v, smask_ref[0, 0], wo_s_ref[...], bo_s_ref[...],
                       self_w_ref, ctx_scratch, num_heads, head_dim)
    h = _layer_norm(x + sa_out, g_sa_ref[...], be_sa_ref[...], eps)

    # ---- cross-attention (fused KV projection over encoder states) ----
    q_c = (jnp.dot(h, wq_c_ref[...], preferred_element_type=jnp.float32)
           + bq_c_ref[...])                          # (T, E), pre-scaled
    kv = (jnp.dot(enc, wkv_c_ref[...], preferred_element_type=jnp.float32)
          + bkv_c_ref[...])                          # (S, 2E)
    k_c = kv[:, :E]
    v_c = kv[:, E:2 * E]
    ca_out = _mha_core(q_c, k_c, v_c, cmask_ref[0, 0], wo_c_ref[...], bo_c_ref[...],
                       cross_w_ref, ctx_scratch, num_heads, head_dim)
    h2 = _layer_norm(h + ca_out, g_ca_ref[...], be_ca_ref[...], eps)

    # ---- position-wise FFN (1x1 convs == linears) + residual + final LN ----
    ff = jnp.maximum(
        jnp.dot(h2, w1_ref[...], preferred_element_type=jnp.float32) + b1_ref[...], 0.0)
    ff = jnp.dot(ff, w2_ref[...], preferred_element_type=jnp.float32) + b2_ref[...]
    out = _layer_norm(ff + h2, g_f_ref[...], be_f_ref[...], eps)

    out_ref[0] = out.astype(out_ref.dtype)
    # TODO(synk): training-mode dropout (p>0) is not implemented (eval mode only).


# ---------------------------------------------------------------------------
# Wrapper.
# ---------------------------------------------------------------------------
def decoder_layer_pallas(dec_inputs, enc_hidden, self_mask, enc_mask, kp, *, num_heads):
    B, T, E = dec_inputs.shape
    S = enc_hidden.shape[1]
    H = num_heads
    D = E // H
    F = kp["w1"].shape[1]

    kernel = functools.partial(_decoder_layer_kernel,
                               num_heads=H, head_dim=D, eps=1e-5)

    def const2d(shape):
        return pl.BlockSpec(shape, lambda b: (0, 0))

    in_specs = [
        pl.BlockSpec((1, T, E), lambda b: (b, 0, 0)),       # dec_inputs
        pl.BlockSpec((1, S, E), lambda b: (b, 0, 0)),       # encoder states
        pl.BlockSpec((1, 1, T, T), lambda b: (b, 0, 0, 0)),  # self-attn mask
        pl.BlockSpec((1, 1, T, S), lambda b: (b, 0, 0, 0)),  # cross-attn mask
        const2d((E, 3 * E)), const2d((1, 3 * E)),           # fused QKV (self)
        const2d((E, E)), const2d((1, E)),                   # self out-proj
        const2d((1, E)), const2d((1, E)),                   # self-attn LN
        const2d((E, E)), const2d((1, E)),                   # cross Q
        const2d((E, 2 * E)), const2d((1, 2 * E)),           # fused KV (cross)
        const2d((E, E)), const2d((1, E)),                   # cross out-proj
        const2d((1, E)), const2d((1, E)),                   # cross-attn LN
        const2d((E, F)), const2d((1, F)),                   # FFN conv1
        const2d((F, E)), const2d((1, E)),                   # FFN conv2
        const2d((1, E)), const2d((1, E)),                   # final LN
    ]
    out_specs = [
        pl.BlockSpec((1, T, E), lambda b: (b, 0, 0)),
        pl.BlockSpec((1, H, T, T), lambda b: (b, 0, 0, 0)),
        pl.BlockSpec((1, H, T, S), lambda b: (b, 0, 0, 0)),
    ]
    out_shape = (
        jax.ShapeDtypeStruct((B, T, E), dec_inputs.dtype),
        jax.ShapeDtypeStruct((B, H, T, T), jnp.float32),
        jax.ShapeDtypeStruct((B, H, T, S), jnp.float32),
    )

    return pl.pallas_call(
        kernel,
        out_shape=out_shape,
        grid_spec=pltpu.PrefetchScalarGridSpec(
            num_scalar_prefetch=0,
            grid=(B,),
            in_specs=in_specs,
            out_specs=out_specs,
            scratch_shapes=[pltpu.VMEM((T, E), jnp.float32)],
        ),
        compiler_params=pltpu.CompilerParams(
            dimension_semantics=("parallel",),
            vmem_limit_bytes=48 * 1024 * 1024,
        ),
    )(dec_inputs, enc_hidden, self_mask, enc_mask,
      kp["wqkv_s"], kp["bqkv_s"], kp["wo_s"], kp["bo_s"], kp["g_sa"], kp["be_sa"],
      kp["wq_c"], kp["bq_c"], kp["wkv_c"], kp["bkv_c"], kp["wo_c"], kp["bo_c"],
      kp["g_ca"], kp["be_ca"],
      kp["w1"], kp["b1"], kp["w2"], kp["b2"], kp["g_f"], kp["be_f"])


# ---------------------------------------------------------------------------
# Parameters.
# ---------------------------------------------------------------------------
def init_params(key, embed_dim, ffn_dim):
    keys = iter(jax.random.split(key, 32))
    se = embed_dim ** -0.5
    sf = ffn_dim ** -0.5

    def u(shape, scale):
        return jax.random.uniform(next(keys), shape, jnp.float32,
                                  minval=-1.0, maxval=1.0) * scale

    p = {}
    for tag in ("s", "c"):  # self / cross attention
        p[f"wq_{tag}"] = u((embed_dim, embed_dim), se)
        p[f"bq_{tag}"] = u((1, embed_dim), se)
        p[f"wk_{tag}"] = u((embed_dim, embed_dim), se)
        p[f"bk_{tag}"] = u((1, embed_dim), se)
        p[f"wv_{tag}"] = u((embed_dim, embed_dim), se)
        p[f"bv_{tag}"] = u((1, embed_dim), se)
        p[f"wo_{tag}"] = u((embed_dim, embed_dim), se)
        p[f"bo_{tag}"] = u((1, embed_dim), se)
    p["w1"] = u((embed_dim, ffn_dim), se)
    p["b1"] = u((1, ffn_dim), se)
    p["w2"] = u((ffn_dim, embed_dim), sf)
    p["b2"] = u((1, embed_dim), sf)
    for tag in ("sa", "ca", "f"):  # layer norms
        p[f"g_{tag}"] = 1.0 + 0.1 * jax.random.normal(next(keys), (1, embed_dim), jnp.float32)
        p[f"be_{tag}"] = 0.1 * jax.random.normal(next(keys), (1, embed_dim), jnp.float32)
    return p


def prepare_kernel_params(p, *, num_heads):
    """Host-side one-time transform: fuse QKV / KV and fold the 1/sqrt(D) scale
    into the Q weights & bias (so the kernel never multiplies the (T,E) q)."""
    E = p["wq_s"].shape[0]
    scaling = (E // num_heads) ** (-0.5)
    return {
        "wqkv_s": jnp.concatenate([p["wq_s"] * scaling, p["wk_s"], p["wv_s"]], axis=1),
        "bqkv_s": jnp.concatenate([p["bq_s"] * scaling, p["bk_s"], p["bv_s"]], axis=1),
        "wo_s": p["wo_s"], "bo_s": p["bo_s"],
        "g_sa": p["g_sa"], "be_sa": p["be_sa"],
        "wq_c": p["wq_c"] * scaling, "bq_c": p["bq_c"] * scaling,
        "wkv_c": jnp.concatenate([p["wk_c"], p["wv_c"]], axis=1),
        "bkv_c": jnp.concatenate([p["bk_c"], p["bv_c"]], axis=1),
        "wo_c": p["wo_c"], "bo_c": p["bo_c"],
        "g_ca": p["g_ca"], "be_ca": p["be_ca"],
        "w1": p["w1"], "b1": p["b1"], "w2": p["w2"], "b2": p["b2"],
        "g_f": p["g_f"], "be_f": p["be_f"],
    }


# ---------------------------------------------------------------------------
# Pure-JAX reference mirroring the PyTorch forward (eval mode).
# ---------------------------------------------------------------------------
def decoder_layer_reference(dec_inputs, enc_hidden, self_mask, enc_mask, p,
                            *, num_heads, eps=1e-5):
    B, T, E = dec_inputs.shape
    D = E // num_heads
    scaling = D ** (-0.5)

    def attention(x_q, x_kv, mask, wq, bq, wk, bk, wv, bv, wo, bo):
        Tq, S = x_q.shape[1], x_kv.shape[1]
        q = (x_q @ wq + bq) * scaling
        k = x_kv @ wk + bk
        v = x_kv @ wv + bv

        def shp(t, L):
            return t.reshape(B, L, num_heads, D).transpose(0, 2, 1, 3)

        qh, kh, vh = shp(q, Tq), shp(k, S), shp(v, S)
        w = jnp.einsum("bhtd,bhsd->bhts", qh, kh) + mask
        w = jax.nn.softmax(w, axis=-1)
        ctx = jnp.einsum("bhts,bhsd->bhtd", w, vh)
        ctx = ctx.transpose(0, 2, 1, 3).reshape(B, Tq, E)
        return ctx @ wo + bo, w

    def ln(x, g, b):
        mu = jnp.mean(x, axis=-1, keepdims=True)
        var = jnp.mean((x - mu) ** 2, axis=-1, keepdims=True)
        return (x - mu) * jax.lax.rsqrt(var + eps) * g + b

    sa, sw = attention(dec_inputs, dec_inputs, self_mask,
                       p["wq_s"], p["bq_s"], p["wk_s"], p["bk_s"],
                       p["wv_s"], p["bv_s"], p["wo_s"], p["bo_s"])
    h = ln(dec_inputs + sa, p["g_sa"], p["be_sa"])
    ca, cw = attention(h, enc_hidden, enc_mask,
                       p["wq_c"], p["bq_c"], p["wk_c"], p["bk_c"],
                       p["wv_c"], p["bv_c"], p["wo_c"], p["bo_c"])
    h2 = ln(h + ca, p["g_ca"], p["be_ca"])
    ff = jnp.maximum(h2 @ p["w1"] + p["b1"], 0.0)
    ff = ff @ p["w2"] + p["b2"]
    out = ln(ff + h2, p["g_f"], p["be_f"])
    return out, sw, cw


if __name__ == "__main__":
    B, T, S, E, H, F = 2, 8, 12, 32, 4, 64

    key = jax.random.PRNGKey(0)
    k_x, k_e, k_p = jax.random.split(key, 3)
    dec_inputs = jax.random.normal(k_x, (B, T, E), jnp.float32)
    enc_hidden = jax.random.normal(k_e, (B, S, E), jnp.float32)

    # Additive masks, PyTorch style: 0 where attended, -1e9 where masked.
    causal = jnp.where(jnp.arange(T)[None, :] <= jnp.arange(T)[:, None], 0.0, -1e9)
    self_mask = jnp.broadcast_to(causal, (B, 1, T, T)).astype(jnp.float32)
    valid = jnp.ones((B, S), dtype=bool).at[1, S - 3:].set(False)   # pad last 3 of batch 1
    enc_mask = jnp.broadcast_to(
        jnp.where(valid, 0.0, -1e9)[:, None, None, :], (B, 1, T, S)).astype(jnp.float32)

    params = init_params(k_p, E, F)
    kparams = prepare_kernel_params(params, num_heads=H)

    out, self_w, cross_w = decoder_layer_pallas(
        dec_inputs, enc_hidden, self_mask, enc_mask, kparams, num_heads=H)
    out, self_w, cross_w = jax.block_until_ready((out, self_w, cross_w))

    ref_out, ref_sw, ref_cw = decoder_layer_reference(
        dec_inputs, enc_hidden, self_mask, enc_mask, params, num_heads=H)

    assert out.shape == (B, T, E)
    # Tolerance covers the approximate (EUP) reciprocal used in the softmax.
    assert jnp.allclose(out, ref_out, atol=2e-2, rtol=2e-2), (
        float(jnp.max(jnp.abs(out - ref_out))))
    assert jnp.allclose(self_w, ref_sw, atol=2e-2, rtol=2e-2)
    assert jnp.allclose(cross_w, ref_cw, atol=2e-2, rtol=2e-2)

    # TODO(synk): past_key_value / incremental-decode caching path is not
    # exercised (DecoderLayer.forward does not return it).
    print("KERNEL_OK")
</pallas_src>

<mosaic_0001>
module attributes {stable_mosaic.version = 11 : i64} {
  func.func @_decoder_layer_kernel(%arg0: i32, %arg1: memref<1x8x32xf32, #tpu.memory_space<vmem>>, %arg2: memref<1x12x32xf32, #tpu.memory_space<vmem>>, %arg3: memref<1x1x8x8xf32, #tpu.memory_space<vmem>>, %arg4: memref<1x1x8x12xf32, #tpu.memory_space<vmem>>, %arg5: memref<32x96xf32, #tpu.memory_space<vmem>>, %arg6: memref<1x96xf32, #tpu.memory_space<vmem>>, %arg7: memref<32x32xf32, #tpu.memory_space<vmem>>, %arg8: memref<1x32xf32, #tpu.memory_space<vmem>>, %arg9: memref<1x32xf32, #tpu.memory_space<vmem>>, %arg10: memref<1x32xf32, #tpu.memory_space<vmem>>, %arg11: memref<32x32xf32, #tpu.memory_space<vmem>>, %arg12: memref<1x32xf32, #tpu.memory_space<vmem>>, %arg13: memref<32x64xf32, #tpu.memory_space<vmem>>, %arg14: memref<1x64xf32, #tpu.memory_space<vmem>>, %arg15: memref<32x32xf32, #tpu.memory_space<vmem>>, %arg16: memref<1x32xf32, #tpu.memory_space<vmem>>, %arg17: memref<1x32xf32, #tpu.memory_space<vmem>>, %arg18: memref<1x32xf32, #tpu.memory_space<vmem>>, %arg19: memref<32x64xf32, #tpu.memory_space<vmem>>, %arg20: memref<1x64xf32, #tpu.memory_space<vmem>>, %arg21: memref<64x32xf32, #tpu.memory_space<vmem>>, %arg22: memref<1x32xf32, #tpu.memory_space<vmem>>, %arg23: memref<1x32xf32, #tpu.memory_space<vmem>>, %arg24: memref<1x32xf32, #tpu.memory_space<vmem>>, %arg25: memref<1x8x32xf32, #tpu.memory_space<vmem>>, %arg26: memref<1x4x8x8xf32, #tpu.memory_space<vmem>>, %arg27: memref<1x4x8x12xf32, #tpu.memory_space<vmem>>, %arg28: memref<8x32xf32, #tpu.memory_space<vmem>>) attributes {dimension_semantics = [#tpu.dimension_semantics<parallel>], iteration_bounds = array<i64: 2>, scalar_prefetch = 0 : i64, scratch_operands = 1 : i64, tpu.core_type = #tpu.core_type<tc>, window_params = [{transform_indices = @transform_0, window_bounds = array<i64: 1, 8, 32>}, {transform_indices = @transform_1, window_bounds = array<i64: 1, 12, 32>}, {transform_indices = @transform_2, window_bounds = array<i64: 1, 1, 8, 8>}, {transform_indices = @transform_3, window_bounds = array<i64: 1, 1, 8, 12>}, {pipeline_mode = #tpu.pipeline_mode<synchronous>, transform_indices = @transform_4, window_bounds = array<i64: 32, 96>}, {pipeline_mode = #tpu.pipeline_mode<synchronous>, transform_indices = @transform_5, window_bounds = array<i64: 1, 96>}, {pipeline_mode = #tpu.pipeline_mode<synchronous>, transform_indices = @transform_6, window_bounds = array<i64: 32, 32>}, {pipeline_mode = #tpu.pipeline_mode<synchronous>, transform_indices = @transform_7, window_bounds = array<i64: 1, 32>}, {pipeline_mode = #tpu.pipeline_mode<synchronous>, transform_indices = @transform_8, window_bounds = array<i64: 1, 32>}, {pipeline_mode = #tpu.pipeline_mode<synchronous>, transform_indices = @transform_9, window_bounds = array<i64: 1, 32>}, {pipeline_mode = #tpu.pipeline_mode<synchronous>, transform_indices = @transform_10, window_bounds = array<i64: 32, 32>}, {pipeline_mode = #tpu.pipeline_mode<synchronous>, transform_indices = @transform_11, window_bounds = array<i64: 1, 32>}, {pipeline_mode = #tpu.pipeline_mode<synchronous>, transform_indices = @transform_12, window_bounds = array<i64: 32, 64>}, {pipeline_mode = #tpu.pipeline_mode<synchronous>, transform_indices = @transform_13, window_bounds = array<i64: 1, 64>}, {pipeline_mode = #tpu.pipeline_mode<synchronous>, transform_indices = @transform_14, window_bounds = array<i64: 32, 32>}, {pipeline_mode = #tpu.pipeline_mode<synchronous>, transform_indices = @transform_15, window_bounds = array<i64: 1, 32>}, {pipeline_mode = #tpu.pipeline_mode<synchronous>, transform_indices = @transform_16, window_bounds = array<i64: 1, 32>}, {pipeline_mode = #tpu.pipeline_mode<synchronous>, transform_indices = @transform_17, window_bounds = array<i64: 1, 32>}, {pipeline_mode = #tpu.pipeline_mode<synchronous>, transform_indices = @transform_18, window_bounds = array<i64: 32, 64>}, {pipeline_mode = #tpu.pipeline_mode<synchronous>, transform_indices = @transform_19, window_bounds = array<i64: 1, 64>}, {pipeline_mode = #tpu.pipeline_mode<synchronous>, transform_indices = @transform_20, window_bounds = array<i64: 64, 32>}, {pipeline_mode = #tpu.pipeline_mode<synchronous>, transform_indices = @transform_21, window_bounds = array<i64: 1, 32>}, {pipeline_mode = #tpu.pipeline_mode<synchronous>, transform_indices = @transform_22, window_bounds = array<i64: 1, 32>}, {pipeline_mode = #tpu.pipeline_mode<synchronous>, transform_indices = @transform_23, window_bounds = array<i64: 1, 32>}, {transform_indices = @transform_24, window_bounds = array<i64: 1, 8, 32>}, {transform_indices = @transform_25, window_bounds = array<i64: 1, 4, 8, 8>}, {transform_indices = @transform_26, window_bounds = array<i64: 1, 4, 8, 12>}]} {
    %c0 = arith.constant 0 : index
    %c0_0 = arith.constant 0 : index
    %c0_1 = arith.constant 0 : index
    %0 = vector.load %arg1[%c0, %c0_0, %c0_1] : memref<1x8x32xf32, #tpu.memory_space<vmem>>, vector<1x8x32xf32>
    %1 = vector.shape_cast %0 : vector<1x8x32xf32> to vector<8x32xf32>
    %c0_2 = arith.constant 0 : index
    %c0_3 = arith.constant 0 : index
    %c0_4 = arith.constant 0 : index
    %2 = vector.load %arg2[%c0_2, %c0_3, %c0_4] : memref<1x12x32xf32, #tpu.memory_space<vmem>>, vector<1x12x32xf32>
    %3 = vector.shape_cast %2 : vector<1x12x32xf32> to vector<12x32xf32>
    %c0_5 = arith.constant 0 : index
    %c0_6 = arith.constant 0 : index
    %4 = vector.load %arg5[%c0_5, %c0_6] : memref<32x96xf32, #tpu.memory_space<vmem>>, vector<32x96xf32>
    %cst = arith.constant dense<0.000000e+00> : vector<8x96xf32>
    %5 = tpu.matmul %1, %4, %cst {dimension_numbers = #tpu.dot_dimension_numbers<[1], [0], [0], [1], [0, 0, 1, 1], [], []>} : vector<8x32xf32>, vector<32x96xf32>, vector<8x96xf32> -> vector<8x96xf32>
    %c0_7 = arith.constant 0 : index
    %c0_8 = arith.constant 0 : index
    %6 = vector.load %arg6[%c0_7, %c0_8] : memref<1x96xf32, #tpu.memory_space<vmem>>, vector<1x96xf32>
    %7 = vector.broadcast %6 : vector<1x96xf32> to vector<8x96xf32>
    %8 = arith.addf %5, %7 : vector<8x96xf32>
    %9 = vector.extract_strided_slice %8 {offsets = [0, 0], sizes = [8, 32], strides = [1, 1]} : vector<8x96xf32> to vector<8x32xf32>
    %10 = vector.extract_strided_slice %8 {offsets = [0, 32], sizes = [8, 32], strides = [1, 1]} : vector<8x96xf32> to vector<8x32xf32>
    %11 = vector.extract_strided_slice %8 {offsets = [0, 64], sizes = [8, 32], strides = [1, 1]} : vector<8x96xf32> to vector<8x32xf32>
    %c0_9 = arith.constant 0 : index
    %c0_10 = arith.constant 0 : index
    %c0_11 = arith.constant 0 : index
    %c0_12 = arith.constant 0 : index
    %12 = vector.load %arg3[%c0_9, %c0_10, %c0_11, %c0_12] : memref<1x1x8x8xf32, #tpu.memory_space<vmem>>, vector<1x1x8x8xf32>
    %13 = vector.shape_cast %12 : vector<1x1x8x8xf32> to vector<8x8xf32>
    %c0_13 = arith.constant 0 : index
    %c0_14 = arith.constant 0 : index
    %14 = vector.load %arg7[%c0_13, %c0_14] : memref<32x32xf32, #tpu.memory_space<vmem>>, vector<32x32xf32>
    %c0_15 = arith.constant 0 : index
    %c0_16 = arith.constant 0 : index
    %15 = vector.load %arg8[%c0_15, %c0_16] : memref<1x32xf32, #tpu.memory_space<vmem>>, vector<1x32xf32>
    %16 = vector.extract_strided_slice %9 {offsets = [0, 0], sizes = [8, 8], strides = [1, 1]} : vector<8x32xf32> to vector<8x8xf32>
    %17 = vector.extract_strided_slice %10 {offsets = [0, 0], sizes = [8, 8], strides = [1, 1]} : vector<8x32xf32> to vector<8x8xf32>
    %18 = vector.extract_strided_slice %11 {offsets = [0, 0], sizes = [8, 8], strides = [1, 1]} : vector<8x32xf32> to vector<8x8xf32>
    %19 = tpu.transpose %17, [1, 0] : vector<8x8xf32> -> vector<8x8xf32>
    %cst_17 = arith.constant dense<0.000000e+00> : vector<8x8xf32>
    %20 = tpu.matmul %16, %19, %cst_17 {dimension_numbers = #tpu.dot_dimension_numbers<[1], [0], [0], [1], [0, 0, 1, 1], [], []>} : vector<8x8xf32>, vector<8x8xf32>, vector<8x8xf32> -> vector<8x8xf32>
    %21 = arith.addf %20, %13 : vector<8x8xf32>
    %cst_18 = arith.constant dense<0xFF800000> : vector<8xf32>
    %22 = vector.multi_reduction <maximumf>, %21, %cst_18 [1] : vector<8x8xf32> to vector<8xf32>
    %23 = vector.shape_cast %22 : vector<8xf32> to vector<8x1xf32>
    %24 = vector.broadcast %23 : vector<8x1xf32> to vector<8x8xf32>
    %25 = arith.subf %21, %24 : vector<8x8xf32>
    %26 = math.exp %25 : vector<8x8xf32>
    %cst_19 = arith.constant dense<0.000000e+00> : vector<8xf32>
    %27 = vector.multi_reduction <add>, %26, %cst_19 [1] : vector<8x8xf32> to vector<8xf32>
    %28 = vector.shape_cast %27 : vector<8xf32> to vector<8x1xf32>
    %29 = tpu.reciprocal %28 {approx = true} : vector<8x1xf32> -> vector<8x1xf32>
    %30 = vector.broadcast %29 : vector<8x1xf32> to vector<8x8xf32>
    %31 = arith.mulf %26, %30 : vector<8x8xf32>
    %c0_20 = arith.constant 0 : index
    %c0_21 = arith.constant 0 : index
    %c0_22 = arith.constant 0 : index
    %c0_23 = arith.constant 0 : index
    %32 = vector.load %arg26[%c0_20, %c0_21, %c0_22, %c0_23] : memref<1x4x8x8xf32, #tpu.memory_space<vmem>>, vector<1x1x8x8xf32>
    %33 = vector.shape_cast %32 : vector<1x1x8x8xf32> to vector<8x8xf32>
    %34 = vector.shape_cast %31 : vector<8x8xf32> to vector<1x1x8x8xf32>
    tpu.vector_store %arg26[%c0_20, %c0_21, %c0_22, %c0_23], %34 {strides = array<i32>} : memref<1x4x8x8xf32, #tpu.memory_space<vmem>>, vector<1x1x8x8xf32>,
    %cst_24 = arith.constant dense<0.000000e+00> : vector<8x8xf32>
    %35 = tpu.matmul %31, %18, %cst_24 {dimension_numbers = #tpu.dot_dimension_numbers<[1], [0], [0], [1], [0, 0, 1, 1], [], []>} : vector<8x8xf32>, vector<8x8xf32>, vector<8x8xf32> -> vector<8x8xf32>
    %c0_25 = arith.constant 0 : index
    %c0_26 = arith.constant 0 : index
    %36 = vector.load %arg28[%c0_25, %c0_26] : memref<8x32xf32, #tpu.memory_space<vmem>>, vector<8x8xf32>
    tpu.vector_store %arg28[%c0_25, %c0_26], %35 {strides = array<i32>} : memref<8x32xf32, #tpu.memory_space<vmem>>, vector<8x8xf32>,
    %37 = vector.extract_strided_slice %9 {offsets = [0, 8], sizes = [8, 8], strides = [1, 1]} : vector<8x32xf32> to vector<8x8xf32>
    %38 = vector.extract_strided_slice %10 {offsets = [0, 8], sizes = [8, 8], strides = [1, 1]} : vector<8x32xf32> to vector<8x8xf32>
    %39 = vector.extract_strided_slice %11 {offsets = [0, 8], sizes = [8, 8], strides = [1, 1]} : vector<8x32xf32> to vector<8x8xf32>
    %40 = tpu.transpose %38, [1, 0] : vector<8x8xf32> -> vector<8x8xf32>
    %cst_27 = arith.constant dense<0.000000e+00> : vector<8x8xf32>
    %41 = tpu.matmul %37, %40, %cst_27 {dimension_numbers = #tpu.dot_dimension_numbers<[1], [0], [0], [1], [0, 0, 1, 1], [], []>} : vector<8x8xf32>, vector<8x8xf32>, vector<8x8xf32> -> vector<8x8xf32>
    %42 = arith.addf %41, %13 : vector<8x8xf32>
    %cst_28 = arith.constant dense<0xFF800000> : vector<8xf32>
    %43 = vector.multi_reduction <maximumf>, %42, %cst_28 [1] : vector<8x8xf32> to vector<8xf32>
    %44 = vector.shape_cast %43 : vector<8xf32> to vector<8x1xf32>
    %45 = vector.broadcast %44 : vector<8x1xf32> to vector<8x8xf32>
    %46 = arith.subf %42, %45 : vector<8x8xf32>
    %47 = math.exp %46 : vector<8x8xf32>
    %cst_29 = arith.constant dense<0.000000e+00> : vector<8xf32>
    %48 = vector.multi_reduction <add>, %47, %cst_29 [1] : vector<8x8xf32> to vector<8xf32>
    %49 = vector.shape_cast %48 : vector<8xf32> to vector<8x1xf32>
    %50 = tpu.reciprocal %49 {approx = true} : vector<8x1xf32> -> vector<8x1xf32>
    %51 = vector.broadcast %50 : vector<8x1xf32> to vector<8x8xf32>
    %52 = arith.mulf %47, %51 : vector<8x8xf32>
    %c0_30 = arith.constant 0 : index
    %c1 = arith.constant 1 : index
    %c0_31 = arith.constant 0 : index
    %c0_32 = arith.constant 0 : index
    %53 = vector.load %arg26[%c0_30, %c1, %c0_31, %c0_32] : memref<1x4x8x8xf32, #tpu.memory_space<vmem>>, vector<1x1x8x8xf32>
    %54 = vector.shape_cast %53 : vector<1x1x8x8xf32> to vector<8x8xf32>
    %55 = vector.shape_cast %52 : vector<8x8xf32> to vector<1x1x8x8xf32>
    tpu.vector_store %arg26[%c0_30, %c1, %c0_31, %c0_32], %55 {strides = array<i32>} : memref<1x4x8x8xf32, #tpu.memory_space<vmem>>, vector<1x1x8x8xf32>,
    %cst_33 = arith.constant dense<0.000000e+00> : vector<8x8xf32>
    %56 = tpu.matmul %52, %39, %cst_33 {dimension_numbers = #tpu.dot_dimension_numbers<[1], [0], [0], [1], [0, 0, 1, 1], [], []>} : vector<8x8xf32>, vector<8x8xf32>, vector<8x8xf32> -> vector<8x8xf32>
    %c0_34 = arith.constant 0 : index
    %c8 = arith.constant 8 : index
    %57 = vector.load %arg28[%c0_34, %c8] : memref<8x32xf32, #tpu.memory_space<vmem>>, vector<8x8xf32>
    tpu.vector_store %arg28[%c0_34, %c8], %56 {strides = array<i32>} : memref<8x32xf32, #tpu.memory_space<vmem>>, vector<8x8xf32>,
    %58 = vector.extract_strided_slice %9 {offsets = [0, 16], sizes = [8, 8], strides = [1, 1]} : vector<8x32xf32> to vector<8x8xf32>
    %59 = vector.extract_strided_slice %10 {offsets = [0, 16], sizes = [8, 8], strides = [1, 1]} : vector<8x32xf32> to vector<8x8xf32>
    %60 = vector.extract_strided_slice %11 {offsets = [0, 16], sizes = [8, 8], strides = [1, 1]} : vector<8x32xf32> to vector<8x8xf32>
    %61 = tpu.transpose %59, [1, 0] : vector<8x8xf32> -> vector<8x8xf32>
    %cst_35 = arith.constant dense<0.000000e+00> : vector<8x8xf32>
    %62 = tpu.matmul %58, %61, %cst_35 {dimension_numbers = #tpu.dot_dimension_numbers<[1], [0], [0], [1], [0, 0, 1, 1], [], []>} : vector<8x8xf32>, vector<8x8xf32>, vector<8x8xf32> -> vector<8x8xf32>
    %63 = arith.addf %62, %13 : vector<8x8xf32>
    %cst_36 = arith.constant dense<0xFF800000> : vector<8xf32>
    %64 = vector.multi_reduction <maximumf>, %63, %cst_36 [1] : vector<8x8xf32> to vector<8xf32>
    %65 = vector.shape_cast %64 : vector<8xf32> to vector<8x1xf32>
    %66 = vector.broadcast %65 : vector<8x1xf32> to vector<8x8xf32>
    %67 = arith.subf %63, %66 : vector<8x8xf32>
    %68 = math.exp %67 : vector<8x8xf32>
    %cst_37 = arith.constant dense<0.000000e+00> : vector<8xf32>
    %69 = vector.multi_reduction <add>, %68, %cst_37 [1] : vector<8x8xf32> to vector<8xf32>
    %70 = vector.shape_cast %69 : vector<8xf32> to vector<8x1xf32>
    %71 = tpu.reciprocal %70 {approx = true} : vector<8x1xf32> -> vector<8x1xf32>
    %72 = vector.broadcast %71 : vector<8x1xf32> to vector<8x8xf32>
    %73 = arith.mulf %68, %72 : vector<8x8xf32>
    %c0_38 = arith.constant 0 : index
    %c2 = arith.constant 2 : index
    %c0_39 = arith.constant 0 : index
    %c0_40 = arith.constant 0 : index
    %74 = vector.load %arg26[%c0_38, %c2, %c0_39, %c0_40] : memref<1x4x8x8xf32, #tpu.memory_space<vmem>>, vector<1x1x8x8xf32>
    %75 = vector.shape_cast %74 : vector<1x1x8x8xf32> to vector<8x8xf32>
    %76 = vector.shape_cast %73 : vector<8x8xf32> to vector<1x1x8x8xf32>
    tpu.vector_store %arg26[%c0_38, %c2, %c0_39, %c0_40], %76 {strides = array<i32>} : memref<1x4x8x8xf32, #tpu.memory_space<vmem>>, vector<1x1x8x8xf32>,
    %cst_41 = arith.constant dense<0.000000e+00> : vector<8x8xf32>
    %77 = tpu.matmul %73, %60, %cst_41 {dimension_numbers = #tpu.dot_dimension_numbers<[1], [0], [0], [1], [0, 0, 1, 1], [], []>} : vector<8x8xf32>, vector<8x8xf32>, vector<8x8xf32> -> vector<8x8xf32>
    %c0_42 = arith.constant 0 : index
    %c16 = arith.constant 16 : index
    %78 = vector.load %arg28[%c0_42, %c16] : memref<8x32xf32, #tpu.memory_space<vmem>>, vector<8x8xf32>
    tpu.vector_store %arg28[%c0_42, %c16], %77 {strides = array<i32>} : memref<8x32xf32, #tpu.memory_space<vmem>>, vector<8x8xf32>,
    %79 = vector.extract_strided_slice %9 {offsets = [0, 24], sizes = [8, 8], strides = [1, 1]} : vector<8x32xf32> to vector<8x8xf32>
    %80 = vector.extract_strided_slice %10 {offsets = [0, 24], sizes = [8, 8], strides = [1, 1]} : vector<8x32xf32> to vector<8x8xf32>
    %81 = vector.extract_strided_slice %11 {offsets = [0, 24], sizes = [8, 8], strides = [1, 1]} : vector<8x32xf32> to vector<8x8xf32>
    %82 = tpu.transpose %80, [1, 0] : vector<8x8xf32> -> vector<8x8xf32>
    %cst_43 = arith.constant dense<0.000000e+00> : vector<8x8xf32>
    %83 = tpu.matmul %79, %82, %cst_43 {dimension_numbers = #tpu.dot_dimension_numbers<[1], [0], [0], [1], [0, 0, 1, 1], [], []>} : vector<8x8xf32>, vector<8x8xf32>, vector<8x8xf32> -> vector<8x8xf32>
    %84 = arith.addf %83, %13 : vector<8x8xf32>
    %cst_44 = arith.constant dense<0xFF800000> : vector<8xf32>
    %85 = vector.multi_reduction <maximumf>, %84, %cst_44 [1] : vector<8x8xf32> to vector<8xf32>
    %86 = vector.shape_cast %85 : vector<8xf32> to vector<8x1xf32>
    %87 = vector.broadcast %86 : vector<8x1xf32> to vector<8x8xf32>
    %88 = arith.subf %84, %87 : vector<8x8xf32>
    %89 = math.exp %88 : vector<8x8xf32>
    %cst_45 = arith.constant dense<0.000000e+00> : vector<8xf32>
    %90 = vector.multi_reduction <add>, %89, %cst_45 [1] : vector<8x8xf32> to vector<8xf32>
    %91 = vector.shape_cast %90 : vector<8xf32> to vector<8x1xf32>
    %92 = tpu.reciprocal %91 {approx = true} : vector<8x1xf32> -> vector<8x1xf32>
    %93 = vector.broadcast %92 : vector<8x1xf32> to vector<8x8xf32>
    %94 = arith.mulf %89, %93 : vector<8x8xf32>
    %c0_46 = arith.constant 0 : index
    %c3 = arith.constant 3 : index
    %c0_47 = arith.constant 0 : index
    %c0_48 = arith.constant 0 : index
    %95 = vector.load %arg26[%c0_46, %c3, %c0_47, %c0_48] : memref<1x4x8x8xf32, #tpu.memory_space<vmem>>, vector<1x1x8x8xf32>
    %96 = vector.shape_cast %95 : vector<1x1x8x8xf32> to vector<8x8xf32>
    %97 = vector.shape_cast %94 : vector<8x8xf32> to vector<1x1x8x8xf32>
    tpu.vector_store %arg26[%c0_46, %c3, %c0_47, %c0_48], %97 {strides = array<i32>} : memref<1x4x8x8xf32, #tpu.memory_space<vmem>>, vector<1x1x8x8xf32>,
    %cst_49 = arith.constant dense<0.000000e+00> : vector<8x8xf32>
    %98 = tpu.matmul %94, %81, %cst_49 {dimension_numbers = #tpu.dot_dimension_numbers<[1], [0], [0], [1], [0, 0, 1, 1], [], []>} : vector<8x8xf32>, vector<8x8xf32>, vector<8x8xf32> -> vector<8x8xf32>
    %c0_50 = arith.constant 0 : index
    %c24 = arith.constant 24 : index
    %99 = vector.load %arg28[%c0_50, %c24] : memref<8x32xf32, #tpu.memory_space<vmem>>, vector<8x8xf32>
    tpu.vector_store %arg28[%c0_50, %c24], %98 {strides = array<i32>} : memref<8x32xf32, #tpu.memory_space<vmem>>, vector<8x8xf32>,
    %c0_51 = arith.constant 0 : index
    %c0_52 = arith.constant 0 : index
    %100 = vector.load %arg28[%c0_51, %c0_52] : memref<8x32xf32, #tpu.memory_space<vmem>>, vector<8x32xf32>
    %cst_53 = arith.constant dense<0.000000e+00> : vector<8x32xf32>
    %101 = tpu.matmul %100, %14, %cst_53 {dimension_numbers = #tpu.dot_dimension_numbers<[1], [0], [0], [1], [0, 0, 1, 1], [], []>} : vector<8x32xf32>, vector<32x32xf32>, vector<8x32xf32> -> vector<8x32xf32>
    %102 = vector.broadcast %15 : vector<1x32xf32> to vector<8x32xf32>
    %103 = arith.addf %101, %102 : vector<8x32xf32>
    %104 = arith.addf %1, %103 : vector<8x32xf32>
    %c0_54 = arith.constant 0 : index
    %c0_55 = arith.constant 0 : index
    %105 = vector.load %arg9[%c0_54, %c0_55] : memref<1x32xf32, #tpu.memory_space<vmem>>, vector<1x32xf32>
    %c0_56 = arith.constant 0 : index
    %c0_57 = arith.constant 0 : index
    %106 = vector.load %arg10[%c0_56, %c0_57] : memref<1x32xf32, #tpu.memory_space<vmem>>, vector<1x32xf32>
    %cst_58 = arith.constant dense<0.000000e+00> : vector<8xf32>
    %107 = vector.multi_reduction <add>, %104, %cst_58 [1] : vector<8x32xf32> to vector<8xf32>
    %108 = vector.shape_cast %107 : vector<8xf32> to vector<8x1xf32>
    %cst_59 = arith.constant 3.200000e+01 : f32
    %109 = vector.broadcast %cst_59 : f32 to vector<8x1xf32>
    %110 = arith.divf %108, %109 : vector<8x1xf32>
    %111 = vector.broadcast %110 : vector<8x1xf32> to vector<8x32xf32>
    %112 = arith.subf %104, %111 : vector<8x32xf32>
    %113 = arith.mulf %112, %112 : vector<8x32xf32>
    %cst_60 = arith.constant dense<0.000000e+00> : vector<8xf32>
    %114 = vector.multi_reduction <add>, %113, %cst_60 [1] : vector<8x32xf32> to vector<8xf32>
    %115 = vector.shape_cast %114 : vector<8xf32> to vector<8x1xf32>
    %cst_61 = arith.constant 3.200000e+01 : f32
    %116 = vector.broadcast %cst_61 : f32 to vector<8x1xf32>
    %117 = arith.divf %115, %116 : vector<8x1xf32>
    %cst_62 = arith.constant 9.99999974E-6 : f32
    %118 = vector.broadcast %cst_62 : f32 to vector<8x1xf32>
    %119 = arith.addf %117, %118 : vector<8x1xf32>
    %120 = math.rsqrt %119 : vector<8x1xf32>
    %121 = vector.broadcast %120 : vector<8x1xf32> to vector<8x32xf32>
    %122 = arith.mulf %112, %121 : vector<8x32xf32>
    %123 = vector.broadcast %105 : vector<1x32xf32> to vector<8x32xf32>
    %124 = arith.mulf %122, %123 : vector<8x32xf32>
    %125 = vector.broadcast %106 : vector<1x32xf32> to vector<8x32xf32>
    %126 = arith.addf %124, %125 : vector<8x32xf32>
    %c0_63 = arith.constant 0 : index
    %c0_64 = arith.constant 0 : index
    %127 = vector.load %arg11[%c0_63, %c0_64] : memref<32x32xf32, #tpu.memory_space<vmem>>, vector<32x32xf32>
    %cst_65 = arith.constant dense<0.000000e+00> : vector<8x32xf32>
    %128 = tpu.matmul %126, %127, %cst_65 {dimension_numbers = #tpu.dot_dimension_numbers<[1], [0], [0], [1], [0, 0, 1, 1], [], []>} : vector<8x32xf32>, vector<32x32xf32>, vector<8x32xf32> -> vector<8x32xf32>
    %c0_66 = arith.constant 0 : index
    %c0_67 = arith.constant 0 : index
    %129 = vector.load %arg12[%c0_66, %c0_67] : memref<1x32xf32, #tpu.memory_space<vmem>>, vector<1x32xf32>
    %130 = vector.broadcast %129 : vector<1x32xf32> to vector<8x32xf32>
    %131 = arith.addf %128, %130 : vector<8x32xf32>
    %c0_68 = arith.constant 0 : index
    %c0_69 = arith.constant 0 : index
    %132 = vector.load %arg13[%c0_68, %c0_69] : memref<32x64xf32, #tpu.memory_space<vmem>>, vector<32x64xf32>
    %cst_70 = arith.constant dense<0.000000e+00> : vector<12x64xf32>
    %133 = tpu.matmul %3, %132, %cst_70 {dimension_numbers = #tpu.dot_dimension_numbers<[1], [0], [0], [1], [0, 0, 1, 1], [], []>} : vector<12x32xf32>, vector<32x64xf32>, vector<12x64xf32> -> vector<12x64xf32>
    %c0_71 = arith.constant 0 : index
    %c0_72 = arith.constant 0 : index
    %134 = vector.load %arg14[%c0_71, %c0_72] : memref<1x64xf32, #tpu.memory_space<vmem>>, vector<1x64xf32>
    %135 = vector.broadcast %134 : vector<1x64xf32> to vector<12x64xf32>
    %136 = arith.addf %133, %135 : vector<12x64xf32>
    %137 = vector.extract_strided_slice %136 {offsets = [0, 0], sizes = [12, 32], strides = [1, 1]} : vector<12x64xf32> to vector<12x32xf32>
    %138 = vector.extract_strided_slice %136 {offsets = [0, 32], sizes = [12, 32], strides = [1, 1]} : vector<12x64xf32> to vector<12x32xf32>
    %c0_73 = arith.constant 0 : index
    %c0_74 = arith.constant 0 : index
    %c0_75 = arith.constant 0 : index
    %c0_76 = arith.constant 0 : index
    %139 = vector.load %arg4[%c0_73, %c0_74, %c0_75, %c0_76] : memref<1x1x8x12xf32, #tpu.memory_space<vmem>>, vector<1x1x8x12xf32>
    %140 = vector.shape_cast %139 : vector<1x1x8x12xf32> to vector<8x12xf32>
    %c0_77 = arith.constant 0 : index
    %c0_78 = arith.constant 0 : index
    %141 = vector.load %arg15[%c0_77, %c0_78] : memref<32x32xf32, #tpu.memory_space<vmem>>, vector<32x32xf32>
    %c0_79 = arith.constant 0 : index
    %c0_80 = arith.constant 0 : index
    %142 = vector.load %arg16[%c0_79, %c0_80] : memref<1x32xf32, #tpu.memory_space<vmem>>, vector<1x32xf32>
    %143 = vector.extract_strided_slice %131 {offsets = [0, 0], sizes = [8, 8], strides = [1, 1]} : vector<8x32xf32> to vector<8x8xf32>
    %144 = vector.extract_strided_slice %137 {offsets = [0, 0], sizes = [12, 8], strides = [1, 1]} : vector<12x32xf32> to vector<12x8xf32>
    %145 = vector.extract_strided_slice %138 {offsets = [0, 0], sizes = [12, 8], strides = [1, 1]} : vector<12x32xf32> to vector<12x8xf32>
    %146 = tpu.transpose %144, [1, 0] : vector<12x8xf32> -> vector<8x12xf32>
    %cst_81 = arith.constant dense<0.000000e+00> : vector<8x12xf32>
    %147 = tpu.matmul %143, %146, %cst_81 {dimension_numbers = #tpu.dot_dimension_numbers<[1], [0], [0], [1], [0, 0, 1, 1], [], []>} : vector<8x8xf32>, vector<8x12xf32>, vector<8x12xf32> -> vector<8x12xf32>
    %148 = arith.addf %147, %140 : vector<8x12xf32>
    %cst_82 = arith.constant dense<0xFF800000> : vector<8xf32>
    %149 = vector.multi_reduction <maximumf>, %148, %cst_82 [1] : vector<8x12xf32> to vector<8xf32>
    %150 = vector.shape_cast %149 : vector<8xf32> to vector<8x1xf32>
    %151 = vector.broadcast %150 : vector<8x1xf32> to vector<8x12xf32>
    %152 = arith.subf %148, %151 : vector<8x12xf32>
    %153 = math.exp %152 : vector<8x12xf32>
    %cst_83 = arith.constant dense<0.000000e+00> : vector<8xf32>
    %154 = vector.multi_reduction <add>, %153, %cst_83 [1] : vector<8x12xf32> to vector<8xf32>
    %155 = vector.shape_cast %154 : vector<8xf32> to vector<8x1xf32>
    %156 = tpu.reciprocal %155 {approx = true} : vector<8x1xf32> -> vector<8x1xf32>
    %157 = vector.broadcast %156 : vector<8x1xf32> to vector<8x12xf32>
    %158 = arith.mulf %153, %157 : vector<8x12xf32>
    %c0_84 = arith.constant 0 : index
    %c0_85 = arith.constant 0 : index
    %c0_86 = arith.constant 0 : index
    %c0_87 = arith.constant 0 : index
    %159 = vector.load %arg27[%c0_84, %c0_85, %c0_86, %c0_87] : memref<1x4x8x12xf32, #tpu.memory_space<vmem>>, vector<1x1x8x12xf32>
    %160 = vector.shape_cast %159 : vector<1x1x8x12xf32> to vector<8x12xf32>
    %161 = vector.shape_cast %158 : vector<8x12xf32> to vector<1x1x8x12xf32>
    tpu.vector_store %arg27[%c0_84, %c0_85, %c0_86, %c0_87], %161 {strides = array<i32>} : memref<1x4x8x12xf32, #tpu.memory_space<vmem>>, vector<1x1x8x12xf32>,
    %cst_88 = arith.constant dense<0.000000e+00> : vector<8x8xf32>
    %162 = tpu.matmul %158, %145, %cst_88 {dimension_numbers = #tpu.dot_dimension_numbers<[1], [0], [0], [1], [0, 0, 1, 1], [], []>} : vector<8x12xf32>, vector<12x8xf32>, vector<8x8xf32> -> vector<8x8xf32>
    %c0_89 = arith.constant 0 : index
    %c0_90 = arith.constant 0 : index
    %163 = vector.load %arg28[%c0_89, %c0_90] : memref<8x32xf32, #tpu.memory_space<vmem>>, vector<8x8xf32>
    tpu.vector_store %arg28[%c0_89, %c0_90], %162 {strides = array<i32>} : memref<8x32xf32, #tpu.memory_space<vmem>>, vector<8x8xf32>,
    %164 = vector.extract_strided_slice %131 {offsets = [0, 8], sizes = [8, 8], strides = [1, 1]} : vector<8x32xf32> to vector<8x8xf32>
    %165 = vector.extract_strided_slice %137 {offsets = [0, 8], sizes = [12, 8], strides = [1, 1]} : vector<12x32xf32> to vector<12x8xf32>
    %166 = vector.extract_strided_slice %138 {offsets = [0, 8], sizes = [12, 8], strides = [1, 1]} : vector<12x32xf32> to vector<12x8xf32>
    %167 = tpu.transpose %165, [1, 0] : vector<12x8xf32> -> vector<8x12xf32>
    %cst_91 = arith.constant dense<0.000000e+00> : vector<8x12xf32>
    %168 = tpu.matmul %164, %167, %cst_91 {dimension_numbers = #tpu.dot_dimension_numbers<[1], [0], [0], [1], [0, 0, 1, 1], [], []>} : vector<8x8xf32>, vector<8x12xf32>, vector<8x12xf32> -> vector<8x12xf32>
    %169 = arith.addf %168, %140 : vector<8x12xf32>
    %cst_92 = arith.constant dense<0xFF800000> : vector<8xf32>
    %170 = vector.multi_reduction <maximumf>, %169, %cst_92 [1] : vector<8x12xf32> to vector<8xf32>
    %171 = vector.shape_cast %170 : vector<8xf32> to vector<8x1xf32>
    %172 = vector.broadcast %171 : vector<8x1xf32> to vector<8x12xf32>
    %173 = arith.subf %169, %172 : vector<8x12xf32>
    %174 = math.exp %173 : vector<8x12xf32>
    %cst_93 = arith.constant dense<0.000000e+00> : vector<8xf32>
    %175 = vector.multi_reduction <add>, %174, %cst_93 [1] : vector<8x12xf32> to vector<8xf32>
    %176 = vector.shape_cast %175 : vector<8xf32> to vector<8x1xf32>
    %177 = tpu.reciprocal %176 {approx = true} : vector<8x1xf32> -> vector<8x1xf32>
    %178 = vector.broadcast %177 : vector<8x1xf32> to vector<8x12xf32>
    %179 = arith.mulf %174, %178 : vector<8x12xf32>
    %c0_94 = arith.constant 0 : index
    %c1_95 = arith.constant 1 : index
    %c0_96 = arith.constant 0 : index
    %c0_97 = arith.constant 0 : index
    %180 = vector.load %arg27[%c0_94, %c1_95, %c0_96, %c0_97] : memref<1x4x8x12xf32, #tpu.memory_space<vmem>>, vector<1x1x8x12xf32>
    %181 = vector.shape_cast %180 : vector<1x1x8x12xf32> to vector<8x12xf32>
    %182 = vector.shape_cast %179 : vector<8x12xf32> to vector<1x1x8x12xf32>
    tpu.vector_store %arg27[%c0_94, %c1_95, %c0_96, %c0_97], %182 {strides = array<i32>} : memref<1x4x8x12xf32, #tpu.memory_space<vmem>>, vector<1x1x8x12xf32>,
    %cst_98 = arith.constant dense<0.000000e+00> : vector<8x8xf32>
    %183 = tpu.matmul %179, %166, %cst_98 {dimension_numbers = #tpu.dot_dimension_numbers<[1], [0], [0], [1], [0, 0, 1, 1], [], []>} : vector<8x12xf32>, vector<12x8xf32>, vector<8x8xf32> -> vector<8x8xf32>
    %c0_99 = arith.constant 0 : index
    %c8_100 = arith.constant 8 : index
    %184 = vector.load %arg28[%c0_99, %c8_100] : memref<8x32xf32, #tpu.memory_space<vmem>>, vector<8x8xf32>
    tpu.vector_store %arg28[%c0_99, %c8_100], %183 {strides = array<i32>} : memref<8x32xf32, #tpu.memory_space<vmem>>, vector<8x8xf32>,
    %185 = vector.extract_strided_slice %131 {offsets = [0, 16], sizes = [8, 8], strides = [1, 1]} : vector<8x32xf32> to vector<8x8xf32>
    %186 = vector.extract_strided_slice %137 {offsets = [0, 16], sizes = [12, 8], strides = [1, 1]} : vector<12x32xf32> to vector<12x8xf32>
    %187 = vector.extract_strided_slice %138 {offsets = [0, 16], sizes = [12, 8], strides = [1, 1]} : vector<12x32xf32> to vector<12x8xf32>
    %188 = tpu.transpose %186, [1, 0] : vector<12x8xf32> -> vector<8x12xf32>
    %cst_101 = arith.constant dense<0.000000e+00> : vector<8x12xf32>
    %189 = tpu.matmul %185, %188, %cst_101 {dimension_numbers = #tpu.dot_dimension_numbers<[1], [0], [0], [1], [0, 0, 1, 1], [], []>} : vector<8x8xf32>, vector<8x12xf32>, vector<8x12xf32> -> vector<8x12xf32>
    %190 = arith.addf %189, %140 : vector<8x12xf32>
    %cst_102 = arith.constant dense<0xFF800000> : vector<8xf32>
    %191 = vector.multi_reduction <maximumf>, %190, %cst_102 [1] : vector<8x12xf32> to vector<8xf32>
    %192 = vector.shape_cast %191 : vector<8xf32> to vector<8x1xf32>
    %193 = vector.broadcast %192 : vector<8x1xf32> to vector<8x12xf32>
    %194 = arith.subf %190, %193 : vector<8x12xf32>
    %195 = math.exp %194 : vector<8x12xf32>
    %cst_103 = arith.constant dense<0.000000e+00> : vector<8xf32>
    %196 = vector.multi_reduction <add>, %195, %cst_103 [1] : vector<8x12xf32> to vector<8xf32>
    %197 = vector.shape_cast %196 : vector<8xf32> to vector<8x1xf32>
    %198 = tpu.reciprocal %197 {approx = true} : vector<8x1xf32> -> vector<8x1xf32>
    %199 = vector.broadcast %198 : vector<8x1xf32> to vector<8x12xf32>
    %200 = arith.mulf %195, %199 : vector<8x12xf32>
    %c0_104 = arith.constant 0 : index
    %c2_105 = arith.constant 2 : index
    %c0_106 = arith.constant 0 : index
    %c0_107 = arith.constant 0 : index
    %201 = vector.load %arg27[%c0_104, %c2_105, %c0_106, %c0_107] : memref<1x4x8x12xf32, #tpu.memory_space<vmem>>, vector<1x1x8x12xf32>
    %202 = vector.shape_cast %201 : vector<1x1x8x12xf32> to vector<8x12xf32>
    %203 = vector.shape_cast %200 : vector<8x12xf32> to vector<1x1x8x12xf32>
    tpu.vector_store %arg27[%c0_104, %c2_105, %c0_106, %c0_107], %203 {strides = array<i32>} : memref<1x4x8x12xf32, #tpu.memory_space<vmem>>, vector<1x1x8x12xf32>,
    %cst_108 = arith.constant dense<0.000000e+00> : vector<8x8xf32>
    %204 = tpu.matmul %200, %187, %cst_108 {dimension_numbers = #tpu.dot_dimension_numbers<[1], [0], [0], [1], [0, 0, 1, 1], [], []>} : vector<8x12xf32>, vector<12x8xf32>, vector<8x8xf32> -> vector<8x8xf32>
    %c0_109 = arith.constant 0 : index
    %c16_110 = arith.constant 16 : index
    %205 = vector.load %arg28[%c0_109, %c16_110] : memref<8x32xf32, #tpu.memory_space<vmem>>, vector<8x8xf32>
    tpu.vector_store %arg28[%c0_109, %c16_110], %204 {strides = array<i32>} : memref<8x32xf32, #tpu.memory_space<vmem>>, vector<8x8xf32>,
    %206 = vector.extract_strided_slice %131 {offsets = [0, 24], sizes = [8, 8], strides = [1, 1]} : vector<8x32xf32> to vector<8x8xf32>
    %207 = vector.extract_strided_slice %137 {offsets = [0, 24], sizes = [12, 8], strides = [1, 1]} : vector<12x32xf32> to vector<12x8xf32>
    %208 = vector.extract_strided_slice %138 {offsets = [0, 24], sizes = [12, 8], strides = [1, 1]} : vector<12x32xf32> to vector<12x8xf32>
    %209 = tpu.transpose %207, [1, 0] : vector<12x8xf32> -> vector<8x12xf32>
    %cst_111 = arith.constant dense<0.000000e+00> : vector<8x12xf32>
    %210 = tpu.matmul %206, %209, %cst_111 {dimension_numbers = #tpu.dot_dimension_numbers<[1], [0], [0], [1], [0, 0, 1, 1], [], []>} : vector<8x8xf32>, vector<8x12xf32>, vector<8x12xf32> -> vector<8x12xf32>
    %211 = arith.addf %210, %140 : vector<8x12xf32>
    %cst_112 = arith.constant dense<0xFF800000> : vector<8xf32>
    %212 = vector.multi_reduction <maximumf>, %211, %cst_112 [1] : vector<8x12xf32> to vector<8xf32>
    %213 = vector.shape_cast %212 : vector<8xf32> to vector<8x1xf32>
    %214 = vector.broadcast %213 : vector<8x1xf32> to vector<8x12xf32>
    %215 = arith.subf %211, %214 : vector<8x12xf32>
    %216 = math.exp %215 : vector<8x12xf32>
    %cst_113 = arith.constant dense<0.000000e+00> : vector<8xf32>
    %217 = vector.multi_reduction <add>, %216, %cst_113 [1] : vector<8x12xf32> to vector<8xf32>
    %218 = vector.shape_cast %217 : vector<8xf32> to vector<8x1xf32>
    %219 = tpu.reciprocal %218 {approx = true} : vector<8x1xf32> -> vector<8x1xf32>
    %220 = vector.broadcast %219 : vector<8x1xf32> to vector<8x12xf32>
    %221 = arith.mulf %216, %220 : vector<8x12xf32>
    %c0_114 = arith.constant 0 : index
    %c3_115 = arith.constant 3 : index
    %c0_116 = arith.constant 0 : index
    %c0_117 = arith.constant 0 : index
    %222 = vector.load %arg27[%c0_114, %c3_115, %c0_116, %c0_117] : memref<1x4x8x12xf32, #tpu.memory_space<vmem>>, vector<1x1x8x12xf32>
    %223 = vector.shape_cast %222 : vector<1x1x8x12xf32> to vector<8x12xf32>
    %224 = vector.shape_cast %221 : vector<8x12xf32> to vector<1x1x8x12xf32>
    tpu.vector_store %arg27[%c0_114, %c3_115, %c0_116, %c0_117], %224 {strides = array<i32>} : memref<1x4x8x12xf32, #tpu.memory_space<vmem>>, vector<1x1x8x12xf32>,
    %cst_118 = arith.constant dense<0.000000e+00> : vector<8x8xf32>
    %225 = tpu.matmul %221, %208, %cst_118 {dimension_numbers = #tpu.dot_dimension_numbers<[1], [0], [0], [1], [0, 0, 1, 1], [], []>} : vector<8x12xf32>, vector<12x8xf32>, vector<8x8xf32> -> vector<8x8xf32>
    %c0_119 = arith.constant 0 : index
    %c24_120 = arith.constant 24 : index
    %226 = vector.load %arg28[%c0_119, %c24_120] : memref<8x32xf32, #tpu.memory_space<vmem>>, vector<8x8xf32>
    tpu.vector_store %arg28[%c0_119, %c24_120], %225 {strides = array<i32>} : memref<8x32xf32, #tpu.memory_space<vmem>>, vector<8x8xf32>,
    %c0_121 = arith.constant 0 : index
    %c0_122 = arith.constant 0 : index
    %227 = vector.load %arg28[%c0_121, %c0_122] : memref<8x32xf32, #tpu.memory_space<vmem>>, vector<8x32xf32>
    %cst_123 = arith.constant dense<0.000000e+00> : vector<8x32xf32>
    %228 = tpu.matmul %227, %141, %cst_123 {dimension_numbers = #tpu.dot_dimension_numbers<[1], [0], [0], [1], [0, 0, 1, 1], [], []>} : vector<8x32xf32>, vector<32x32xf32>, vector<8x32xf32> -> vector<8x32xf32>
    %229 = vector.broadcast %142 : vector<1x32xf32> to vector<8x32xf32>
    %230 = arith.addf %228, %229 : vector<8x32xf32>
    %231 = arith.addf %126, %230 : vector<8x32xf32>
    %c0_124 = arith.constant 0 : index
    %c0_125 = arith.constant 0 : index
    %232 = vector.load %arg17[%c0_124, %c0_125] : memref<1x32xf32, #tpu.memory_space<vmem>>, vector<1x32xf32>
    %c0_126 = arith.constant 0 : index
    %c0_127 = arith.constant 0 : index
    %233 = vector.load %arg18[%c0_126, %c0_127] : memref<1x32xf32, #tpu.memory_space<vmem>>, vector<1x32xf32>
    %cst_128 = arith.constant dense<0.000000e+00> : vector<8xf32>
    %234 = vector.multi_reduction <add>, %231, %cst_128 [1] : vector<8x32xf32> to vector<8xf32>
    %235 = vector.shape_cast %234 : vector<8xf32> to vector<8x1xf32>
    %cst_129 = arith.constant 3.200000e+01 : f32
    %236 = vector.broadcast %cst_129 : f32 to vector<8x1xf32>
    %237 = arith.divf %235, %236 : vector<8x1xf32>
    %238 = vector.broadcast %237 : vector<8x1xf32> to vector<8x32xf32>
    %239 = arith.subf %231, %238 : vector<8x32xf32>
    %240 = arith.mulf %239, %239 : vector<8x32xf32>
    %cst_130 = arith.constant dense<0.000000e+00> : vector<8xf32>
    %241 = vector.multi_reduction <add>, %240, %cst_130 [1] : vector<8x32xf32> to vector<8xf32>
    %242 = vector.shape_cast %241 : vector<8xf32> to vector<8x1xf32>
    %cst_131 = arith.constant 3.200000e+01 : f32
    %243 = vector.broadcast %cst_131 : f32 to vector<8x1xf32>
    %244 = arith.divf %242, %243 : vector<8x1xf32>
    %cst_132 = arith.constant 9.99999974E-6 : f32
    %245 = vector.broadcast %cst_132 : f32 to vector<8x1xf32>
    %246 = arith.addf %244, %245 : vector<8x1xf32>
    %247 = math.rsqrt %246 : vector<8x1xf32>
    %248 = vector.broadcast %247 : vector<8x1xf32> to vector<8x32xf32>
    %249 = arith.mulf %239, %248 : vector<8x32xf32>
    %250 = vector.broadcast %232 : vector<1x32xf32> to vector<8x32xf32>
    %251 = arith.mulf %249, %250 : vector<8x32xf32>
    %252 = vector.broadcast %233 : vector<1x32xf32> to vector<8x32xf32>
    %253 = arith.addf %251, %252 : vector<8x32xf32>
    %c0_133 = arith.constant 0 : index
    %c0_134 = arith.constant 0 : index
    %254 = vector.load %arg19[%c0_133, %c0_134] : memref<32x64xf32, #tpu.memory_space<vmem>>, vector<32x64xf32>
    %cst_135 = arith.constant dense<0.000000e+00> : vector<8x64xf32>
    %255 = tpu.matmul %253, %254, %cst_135 {dimension_numbers = #tpu.dot_dimension_numbers<[1], [0], [0], [1], [0, 0, 1, 1], [], []>} : vector<8x32xf32>, vector<32x64xf32>, vector<8x64xf32> -> vector<8x64xf32>
    %c0_136 = arith.constant 0 : index
    %c0_137 = arith.constant 0 : index
    %256 = vector.load %arg20[%c0_136, %c0_137] : memref<1x64xf32, #tpu.memory_space<vmem>>, vector<1x64xf32>
    %257 = vector.broadcast %256 : vector<1x64xf32> to vector<8x64xf32>
    %258 = arith.addf %255, %257 : vector<8x64xf32>
    %cst_138 = arith.constant 0.000000e+00 : f32
    %259 = vector.broadcast %cst_138 : f32 to vector<8x64xf32>
    %260 = arith.maximumf %258, %259 : vector<8x64xf32>
    %c0_139 = arith.constant 0 : index
    %c0_140 = arith.constant 0 : index
    %261 = vector.load %arg21[%c0_139, %c0_140] : memref<64x32xf32, #tpu.memory_space<vmem>>, vector<64x32xf32>
    %cst_141 = arith.constant dense<0.000000e+00> : vector<8x32xf32>
    %262 = tpu.matmul %260, %261, %cst_141 {dimension_numbers = #tpu.dot_dimension_numbers<[1], [0], [0], [1], [0, 0, 1, 1], [], []>} : vector<8x64xf32>, vector<64x32xf32>, vector<8x32xf32> -> vector<8x32xf32>
    %c0_142 = arith.constant 0 : index
    %c0_143 = arith.constant 0 : index
    %263 = vector.load %arg22[%c0_142, %c0_143] : memref<1x32xf32, #tpu.memory_space<vmem>>, vector<1x32xf32>
    %264 = vector.broadcast %263 : vector<1x32xf32> to vector<8x32xf32>
    %265 = arith.addf %262, %264 : vector<8x32xf32>
    %266 = arith.addf %265, %253 : vector<8x32xf32>
    %c0_144 = arith.constant 0 : index
    %c0_145 = arith.constant 0 : index
    %267 = vector.load %arg23[%c0_144, %c0_145] : memref<1x32xf32, #tpu.memory_space<vmem>>, vector<1x32xf32>
    %c0_146 = arith.constant 0 : index
    %c0_147 = arith.constant 0 : index
    %268 = vector.load %arg24[%c0_146, %c0_147] : memref<1x32xf32, #tpu.memory_space<vmem>>, vector<1x32xf32>
    %cst_148 = arith.constant dense<0.000000e+00> : vector<8xf32>
    %269 = vector.multi_reduction <add>, %266, %cst_148 [1] : vector<8x32xf32> to vector<8xf32>
    %270 = vector.shape_cast %269 : vector<8xf32> to vector<8x1xf32>
    %cst_149 = arith.constant 3.200000e+01 : f32
    %271 = vector.broadcast %cst_149 : f32 to vector<8x1xf32>
    %272 = arith.divf %270, %271 : vector<8x1xf32>
    %273 = vector.broadcast %272 : vector<8x1xf32> to vector<8x32xf32>
    %274 = arith.subf %266, %273 : vector<8x32xf32>
    %275 = arith.mulf %274, %274 : vector<8x32xf32>
    %cst_150 = arith.constant dense<0.000000e+00> : vector<8xf32>
    %276 = vector.multi_reduction <add>, %275, %cst_150 [1] : vector<8x32xf32> to vector<8xf32>
    %277 = vector.shape_cast %276 : vector<8xf32> to vector<8x1xf32>
    %cst_151 = arith.constant 3.200000e+01 : f32
    %278 = vector.broadcast %cst_151 : f32 to vector<8x1xf32>
    %279 = arith.divf %277, %278 : vector<8x1xf32>
    %cst_152 = arith.constant 9.99999974E-6 : f32
    %280 = vector.broadcast %cst_152 : f32 to vector<8x1xf32>
    %281 = arith.addf %279, %280 : vector<8x1xf32>
    %282 = math.rsqrt %281 : vector<8x1xf32>
    %283 = vector.broadcast %282 : vector<8x1xf32> to vector<8x32xf32>
    %284 = arith.mulf %274, %283 : vector<8x32xf32>
    %285 = vector.broadcast %267 : vector<1x32xf32> to vector<8x32xf32>
    %286 = arith.mulf %284, %285 : vector<8x32xf32>
    %287 = vector.broadcast %268 : vector<1x32xf32> to vector<8x32xf32>
    %288 = arith.addf %286, %287 : vector<8x32xf32>
    %c0_153 = arith.constant 0 : index
    %c0_154 = arith.constant 0 : index
    %c0_155 = arith.constant 0 : index
    %289 = vector.load %arg25[%c0_153, %c0_154, %c0_155] : memref<1x8x32xf32, #tpu.memory_space<vmem>>, vector<1x8x32xf32>
    %290 = vector.shape_cast %289 : vector<1x8x32xf32> to vector<8x32xf32>
    %291 = vector.shape_cast %288 : vector<8x32xf32> to vector<1x8x32xf32>
    tpu.vector_store %arg25[%c0_153, %c0_154, %c0_155], %291 {strides = array<i32>} : memref<1x8x32xf32, #tpu.memory_space<vmem>>, vector<1x8x32xf32>,
    return
  }
  func.func @transform_0(%arg0: i32) -> (i32, i32, i32) {
    %c0_i32 = arith.constant 0 : i32
    %c0_i32_0 = arith.constant 0 : i32
    %c0_i32_1 = arith.constant 0 : i32
    return %arg0, %c0_i32, %c0_i32_0 : i32, i32, i32
  }
  func.func @transform_1(%arg0: i32) -> (i32, i32, i32) {
    %c0_i32 = arith.constant 0 : i32
    %c0_i32_0 = arith.constant 0 : i32
    %c0_i32_1 = arith.constant 0 : i32
    return %arg0, %c0_i32, %c0_i32_0 : i32, i32, i32
  }
  func.func @transform_2(%arg0: i32) -> (i32, i32, i32, i32) {
    %c0_i32 = arith.constant 0 : i32
    %c0_i32_0 = arith.constant 0 : i32
    %c0_i32_1 = arith.constant 0 : i32
    %c0_i32_2 = arith.constant 0 : i32
    return %arg0, %c0_i32, %c0_i32_0, %c0_i32_1 : i32, i32, i32, i32
  }
  func.func @transform_3(%arg0: i32) -> (i32, i32, i32, i32) {
    %c0_i32 = arith.constant 0 : i32
    %c0_i32_0 = arith.constant 0 : i32
    %c0_i32_1 = arith.constant 0 : i32
    %c0_i32_2 = arith.constant 0 : i32
    return %arg0, %c0_i32, %c0_i32_0, %c0_i32_1 : i32, i32, i32, i32
  }
  func.func @transform_4(%arg0: i32) -> (i32, i32) {
    %c0_i32 = arith.constant 0 : i32
    %c0_i32_0 = arith.constant 0 : i32
    %c0_i32_1 = arith.constant 0 : i32
    return %c0_i32, %c0_i32_0 : i32, i32
  }
  func.func @transform_5(%arg0: i32) -> (i32, i32) {
    %c0_i32 = arith.constant 0 : i32
    %c0_i32_0 = arith.constant 0 : i32
    %c0_i32_1 = arith.constant 0 : i32
    return %c0_i32, %c0_i32_0 : i32, i32
  }
  func.func @transform_6(%arg0: i32) -> (i32, i32) {
    %c0_i32 = arith.constant 0 : i32
    %c0_i32_0 = arith.constant 0 : i32
    %c0_i32_1 = arith.constant 0 : i32
    return %c0_i32, %c0_i32_0 : i32, i32
  }
  func.func @transform_7(%arg0: i32) -> (i32, i32) {
    %c0_i32 = arith.constant 0 : i32
    %c0_i32_0 = arith.constant 0 : i32
    %c0_i32_1 = arith.constant 0 : i32
    return %c0_i32, %c0_i32_0 : i32, i32
  }
  func.func @transform_8(%arg0: i32) -> (i32, i32) {
    %c0_i32 = arith.constant 0 : i32
    %c0_i32_0 = arith.constant 0 : i32
    %c0_i32_1 = arith.constant 0 : i32
    return %c0_i32, %c0_i32_0 : i32, i32
  }
  func.func @transform_9(%arg0: i32) -> (i32, i32) {
    %c0_i32 = arith.constant 0 : i32
    %c0_i32_0 = arith.constant 0 : i32
    %c0_i32_1 = arith.constant 0 : i32
    return %c0_i32, %c0_i32_0 : i32, i32
  }
  func.func @transform_10(%arg0: i32) -> (i32, i32) {
    %c0_i32 = arith.constant 0 : i32
    %c0_i32_0 = arith.constant 0 : i32
    %c0_i32_1 = arith.constant 0 : i32
    return %c0_i32, %c0_i32_0 : i32, i32
  }
  func.func @transform_11(%arg0: i32) -> (i32, i32) {
    %c0_i32 = arith.constant 0 : i32
    %c0_i32_0 = arith.constant 0 : i32
    %c0_i32_1 = arith.constant 0 : i32
    return %c0_i32, %c0_i32_0 : i32, i32
  }
  func.func @transform_12(%arg0: i32) -> (i32, i32) {
    %c0_i32 = arith.constant 0 : i32
    %c0_i32_0 = arith.constant 0 : i32
    %c0_i32_1 = arith.constant 0 : i32
    return %c0_i32, %c0_i32_0 : i32, i32
  }
  func.func @transform_13(%arg0: i32) -> (i32, i32) {
    %c0_i32 = arith.constant 0 : i32
    %c0_i32_0 = arith.constant 0 : i32
    %c0_i32_1 = arith.constant 0 : i32
    return %c0_i32, %c0_i32_0 : i32, i32
  }
  func.func @transform_14(%arg0: i32) -> (i32, i32) {
    %c0_i32 = arith.constant 0 : i32
    %c0_i32_0 = arith.constant 0 : i32
    %c0_i32_1 = arith.constant 0 : i32
    return %c0_i32, %c0_i32_0 : i32, i32
  }
  func.func @transform_15(%arg0: i32) -> (i32, i32) {
    %c0_i32 = arith.constant 0 : i32
    %c0_i32_0 = arith.constant 0 : i32
    %c0_i32_1 = arith.constant 0 : i32
    return %c0_i32, %c0_i32_0 : i32, i32
  }
  func.func @transform_16(%arg0: i32) -> (i32, i32) {
    %c0_i32 = arith.constant 0 : i32
    %c0_i32_0 = arith.constant 0 : i32
    %c0_i32_1 = arith.constant 0 : i32
    return %c0_i32, %c0_i32_0 : i32, i32
  }
  func.func @transform_17(%arg0: i32) -> (i32, i32) {
    %c0_i32 = arith.constant 0 : i32
    %c0_i32_0 = arith.constant 0 : i32
    %c0_i32_1 = arith.constant 0 : i32
    return %c0_i32, %c0_i32_0 : i32, i32
  }
  func.func @transform_18(%arg0: i32) -> (i32, i32) {
    %c0_i32 = arith.constant 0 : i32
    %c0_i32_0 = arith.constant 0 : i32
    %c0_i32_1 = arith.constant 0 : i32
    return %c0_i32, %c0_i32_0 : i32, i32
  }
  func.func @transform_19(%arg0: i32) -> (i32, i32) {
    %c0_i32 = arith.constant 0 : i32
    %c0_i32_0 = arith.constant 0 : i32
    %c0_i32_1 = arith.constant 0 : i32
    return %c0_i32, %c0_i32_0 : i32, i32
  }
  func.func @transform_20(%arg0: i32) -> (i32, i32) {
    %c0_i32 = arith.constant 0 : i32
    %c0_i32_0 = arith.constant 0 : i32
    %c0_i32_1 = arith.constant 0 : i32
    return %c0_i32, %c0_i32_0 : i32, i32
  }
  func.func @transform_21(%arg0: i32) -> (i32, i32) {
    %c0_i32 = arith.constant 0 : i32
    %c0_i32_0 = arith.constant 0 : i32
    %c0_i32_1 = arith.constant 0 : i32
    return %c0_i32, %c0_i32_0 : i32, i32
  }
  func.func @transform_22(%arg0: i32) -> (i32, i32) {
    %c0_i32 = arith.constant 0 : i32
    %c0_i32_0 = arith.constant 0 : i32
    %c0_i32_1 = arith.constant 0 : i32
    return %c0_i32, %c0_i32_0 : i32, i32
  }
  func.func @transform_23(%arg0: i32) -> (i32, i32) {
    %c0_i32 = arith.constant 0 : i32
    %c0_i32_0 = arith.constant 0 : i32
    %c0_i32_1 = arith.constant 0 : i32
    return %c0_i32, %c0_i32_0 : i32, i32
  }
  func.func @transform_24(%arg0: i32) -> (i32, i32, i32) {
    %c0_i32 = arith.constant 0 : i32
    %c0_i32_0 = arith.constant 0 : i32
    %c0_i32_1 = arith.constant 0 : i32
    return %arg0, %c0_i32, %c0_i32_0 : i32, i32, i32
  }
  func.func @transform_25(%arg0: i32) -> (i32, i32, i32, i32) {
    %c0_i32 = arith.constant 0 : i32
    %c0_i32_0 = arith.constant 0 : i32
    %c0_i32_1 = arith.constant 0 : i32
    %c0_i32_2 = arith.constant 0 : i32
    return %arg0, %c0_i32, %c0_i32_0, %c0_i32_1 : i32, i32, i32, i32
  }
  func.func @transform_26(%arg0: i32) -> (i32, i32, i32, i32) {
    %c0_i32 = arith.constant 0 : i32
    %c0_i32_0 = arith.constant 0 : i32
    %c0_i32_1 = arith.constant 0 : i32
    %c0_i32_2 = arith.constant 0 : i32
    return %arg0, %c0_i32, %c0_i32_0, %c0_i32_1 : i32, i32, i32, i32
  }
}

</mosaic_0001>

<bundles_post_ra>
// kernel: tpu_custom_call.1
= control target key start
LH: loop header
LB: loop body
LE: loop exit
PB: predicated region body
PF: predicated region fallthrough
CT: control target
= control target key end

     0   :  { %s4902_s0 = inlined_call_operand.hbm [shape: f32[2,8,32], index: 0, kind: input, shape index: {}]   ;;  %s4903_s1 = inlined_call_operand.vmem [shape: f32[2,12,32], index: 1, kind: input, shape index: {}]   ;;  %s4904_s2 = inlined_call_operand.hbm [shape: f32[2,1,8,8], index: 2, kind: input, shape index: {}]   ;;  %s4905_s3 = inlined_call_operand.hbm [shape: f32[2,1,8,12], index: 3, kind: input, shape index: {}]   ;;  %s4906_s4 = inlined_call_operand.vmem [shape: f32[32,96], index: 4, kind: input, shape index: {}]   ;;  %s4907_s5 = inlined_call_operand.vmem [shape: f32[1,96], index: 5, kind: input, shape index: {}]   ;;  %s4908_s6 = inlined_call_operand.vmem [shape: f32[32,32], index: 6, kind: input, shape index: {}]   ;;  %s4909_s7 = inlined_call_operand.vmem [shape: f32[1,32], index: 7, kind: input, shape index: {}]   ;;  %s4910_s8 = inlined_call_operand.vmem [shape: f32[1,32], index: 8, kind: input, shape index: {}]   ;;  %s4911_s9 = inlined_call_operand.vmem [shape: f32[1,32], index: 9, kind: input, shape index: {}]   ;;  %s4912_s10 = inlined_call_operand.vmem [shape: f32[32,32], index: 10, kind: input, shape index: {}]   ;;  %s4913_s11 = inlined_call_operand.vmem [shape: f32[1,32], index: 11, kind: input, shape index: {}]   ;;  %s4914_s12 = inlined_call_operand.vmem [shape: f32[32,64], index: 12, kind: input, shape index: {}]   ;;  %s4915_s13 = inlined_call_operand.vmem [shape: f32[1,64], index: 13, kind: input, shape index: {}]   ;;  %s4916_s14 = inlined_call_operand.vmem [shape: f32[32,32], index: 14, kind: input, shape index: {}]   ;;  %s4917_s15 = inlined_call_operand.vmem [shape: f32[1,32], index: 15, kind: input, shape index: {}]   ;;  %s4918_s16 = inlined_call_operand.vmem [shape: f32[1,32], index: 16, kind: input, shape index: {}]   ;;  %s4919_s17 = inlined_call_operand.vmem [shape: f32[1,32], index: 17, kind: input, shape index: {}]   ;;  %s4920_s18 = inlined_call_operand.hbm [shape: f32[32,64], index: 18, kind: input, shape index: {}]   ;;  %s4921_s19 = inlined_call_operand.vmem [shape: f32[1,64], index: 19, kind: input, shape index: {}]   ;;  %s4922_s20 = inlined_call_operand.vmem [shape: f32[64,32], index: 20, kind: input, shape index: {}]   ;;  %s4923_s21 = inlined_call_operand.vmem [shape: f32[1,32], index: 21, kind: input, shape index: {}]   ;;  %s4924_s22 = inlined_call_operand.vmem [shape: f32[1,32], index: 22, kind: input, shape index: {}]   ;;  %s4925_s23 = inlined_call_operand.vmem [shape: f32[1,32], index: 23, kind: input, shape index: {}]   ;;  %s4926_s24 = inlined_call_operand.hbm [shape: f32[2,8,32], index: 24, kind: output, shape index: {0}]   ;;  %s4927_s25 = inlined_call_operand.hbm [shape: f32[2,4,8,8], index: 25, kind: output, shape index: {1}]   ;;  %s4928_s26 = inlined_call_operand.hbm [shape: f32[2,4,8,12], index: 26, kind: output, shape index: {2}]  }
   0x1   :  { %4969 = sst [smem:[#allocation26_spill]] %s4902_s0 }
   0x2   :  { %4970 = sst [smem:[#allocation27_spill]] %s4903_s1 }
   0x3   :  { %4971 = sst [smem:[#allocation28_spill]] %s4904_s2 }
   0x4   :  { %4972 = sst [smem:[#allocation29_spill]] %s4905_s3 }
   0x5   :  { %4973 = sst [smem:[#allocation30_spill]] %s4906_s4 }
   0x6   :  { %4974 = sst [smem:[#allocation31_spill]] %s4907_s5 }
   0x7   :  { %4975 = sst [smem:[#allocation32_spill]] %s4908_s6 }
   0x8   :  { %4976 = sst [smem:[#allocation33_spill]] %s4909_s7 }
   0x9   :  { %4977 = sst [smem:[#allocation34_spill]] %s4910_s8 }
   0xa   :  { %4978 = sst [smem:[#allocation35_spill]] %s4911_s9 }
   0xb   :  { %4979 = sst [smem:[#allocation36_spill]] %s4912_s10 }
   0xc   :  { %4980 = sst [smem:[#allocation37_spill]] %s4913_s11 }
   0xd   :  { %4981 = sst [smem:[#allocation38_spill]] %s4916_s14 }
   0xe   :  { %4982 = sst [smem:[#allocation39_spill]] %s4917_s15 }
   0xf   :  { %4983 = sst [smem:[#allocation40_spill]] %s4918_s16 }
  0x10   :  { %4984 = sst [smem:[#allocation41_spill]] %s4919_s17 }
  0x11   :  { %4985 = sst [smem:[#allocation42_spill]] %s4921_s19 }
  0x12   :  { %4986 = sst [smem:[#allocation43_spill]] %s4922_s20 }
  0x13   :  { %4987 = sst [smem:[#allocation44_spill]] %s4923_s21 }
  0x14   :  { %4988 = sst [smem:[#allocation45_spill]] %s4924_s22 }
  0x15   :  { %4989 = sst [smem:[#allocation46_spill]] %s4925_s23 }
  0x16   :  { %4990 = sst [smem:[#allocation47_spill]] %s4926_s24 }
  0x17   :  { %4991 = sst [smem:[#allocation48_spill]] %s4927_s25 }
  0x18   :  { %4992 = sst [smem:[#allocation49_spill]] %s4928_s26 }
  0x19   :  { %32 = vsyncpa [#allocation4], 0 }
  0x1a   :  { %34 = vsyncpa [#allocation4 + $0x1], 0 }
  0x1b   :  { %35 = vsyncpa [#allocation7], 0 }
  0x1c   :  { %37 = vsyncpa [#allocation7 + $0x1], 0 }
  0x1d   :  { %38 = vsyncpa [#allocation10], 0 }
  0x1e   :  { %39 = vsyncpa [#allocation5], 0 }
  0x1f   :  { %41 = vsyncpa [#allocation5 + $0x1], 0 }
  0x20   :  { %42 = vsyncpa [#allocation13], 0 }
  0x21   :  { %44 = vsyncpa [#allocation13 + $0x1], 0  ;;  %s4173_s27 = smov 0   ;;  %s4175_s3 = smov 0  }
  0x22   :  { %s4177_s7 = smov 0   ;;  %s4179_s28 = smov 0  }
  0x23 LB: > { %4993 = sst [smem:[#allocation20_spill]] %s3998_s27  ;;  %s4194_s8 = sadd.s32 1, %s4010_s28   ;;  %s4010_s28 = sphi %s4179_s28, %s5054_s28   ;;  %s4006_s7 = sphi %s4177_s7, %s5058_s7   ;;  %s4002_s3 = sphi %s4175_s3, %s5057_s3   ;;  %s3998_s27 = sphi %s4173_s27, %s5056_s27  }
  0x24   : > { %4994 = sst [smem:[#allocation21_spill]] %s4010_s28  ;;  %s57_s4 = sadd.s32 1, %s4006_s7 }
  0x25   : > { %4995 = sst [smem:[#allocation22_spill]] %s4194_s8  ;;  %s54_s29 = ssub.s32 %s4010_s28, %s4194_s8 }
  0x26   : > { %p4941_p0 = scmp.ne.s32.totalorder %s4006_s7, %s4002_s3  ;;  %p55_p1 = scmp.eq.s32.totalorder %s54_s29, 0 }
  0x27   : > { %p65_p2 = scmp.eq.s32.totalorder %s4010_s28, 0  ;;  %p3679_p4 = scmp.lt.s32.totalorder %s4010_s28, 2 }
  0x28   : > { %s4205_s0 = scalar_select %p55_p1, %s4006_s7, %s57_s4  }
  0x29   : > { %p66_p5 = por %p65_p2, %p4941_p0  ;;  %s4935_s9 = sand.u32 1, %s4006_s7  }
  0x2a   : > { %4996 = sst [smem:[#allocation23_spill]] %s4205_s0  ;;  %s4213_s30 = sshll.u32 %s4935_s9, 3 }
  0x2b   : > { %s4216_s2 = sshll.u32 %s4010_s28, 7  ;;  %p4218_p6 = pnand %p3679_p4, %p66_p5 }
  0x2c   : > { %s766_s10 = sand.u32 1, %s4010_s28   ;;  %s4998_s4 = sld [smem:[#allocation28_spill]] }
  0x2d   : > { %s770_s9 = scalar_lea.vmem [#allocation6], %s4213_s30  ;;  %s4230_s8 = scalar_lea.sflag [#allocation7], %s766_s10 }
  0x2e   : > { %s777_s0 = sshll.u32 %s770_s9, 4  ;;  %p4236_p8 = pneg %p4218_p6  ;;  %s778_s0 = int_to_ptr.vmem [resolvable:$true] %s777_s0 }
  0x32   : > { %s4227_s29 = scalar_lea.hbm %s4998_s4, %s4216_s2  ;;  %s3777_s22 = scalar_lea.hbm %s4998_s4, 256 }
  0x33   : > { %s3772_s24 = scalar_lea.hbm %s4227_s29, 128  ;;  %p3778_p11 = scmp.lt.s32.totalorder %s4227_s29, %s4998_s4 }
  0x34   : > { %p3773_p7 = scmp.ne.s32.totalorder %s4227_s29, %s3772_s24  ;;  %p3779_p12 = scmp.lt.s32.totalorder %s3777_s22, %s3772_s24 }
  0x36   : > { %p3775_p9 = pnand %p4236_p8, %p3773_p7  ;;  %p3780_p13 = por %p3779_p12, %p3778_p11 }
  0x38   : > { %p3776_p10 = pneg %p3775_p9 }
  0x3a   : > { %p3781_p1 = pnand %p3780_p13, %p3776_p10 }
  0x3c   : > { %3784 = shalt.err (!%p3781_p1)
}
  0x3d   : > { %s3785_s10 = scalar_lea.vmem %s778_s0, 128  ;;  %s4012_s25 = smov [#allocation6]  }
  0x3e   : > { %p3786_p2 = scmp.ne.s32.totalorder %s778_s0, %s3785_s10  ;;  %s3790_s21 = sshll.u32 %s4012_s25, 4  ;;  %s3791_s21 = int_to_ptr.vmem [resolvable:$false] %s3790_s21 }
  0x3f   : > { %s3792_s19 = scalar_lea.vmem %s3791_s21, 256  ;;  %p3793_p7 = scmp.lt.s32.totalorder %s778_s0, %s3791_s21 }
  0x40   : > { %p3788_p4 = pnand %p3786_p2, %p4236_p8  ;;  %p3794_p9 = scmp.lt.s32.totalorder %s3792_s19, %s3785_s10 }
  0x42   : > { %p3789_p5 = pneg %p3788_p4  ;;  %p3795_p3 = por %p3794_p9, %p3793_p7 }
  0x44   : > { %p3796_p0 = pnand %p3795_p3, %p3789_p5 }
  0x46   : > { %3799 = shalt.err (!%p3796_p0)
}
  0x47   : > { %3664 = dma.hbm_to_vmem [thread:$0]  (!%p4218_p6), %s4227_s29, 128, %s778_s0, %s4230_s8  }
  0x48   : > { %s4256_s22 = sadd.s32 4294967295, %s4010_s28   ;;  %s4942_s19 = sadd.s32 4294967294, %s4010_s28  }
  0x49   : > { %p70_p0 = scmp.ne.s32.totalorder %s4002_s3, %s3998_s27  ;;  %p4950_p3 = scmp.eq.s32.totalorder %s4256_s22, 0 }
  0x4a   : > { %p592_p10 = scmp.eq.s32.totalorder %s4256_s22, 1  ;;  %p598_p11 = scmp.eq.s32.totalorder %s4942_s19, 1 }
  0x4b   : > { %p4267_p12 = por %p4950_p3, %p70_p0  ;;  %p3286_p13 = scmp.ge.s32.totalorder %s4010_s28, 1 }
  0x4c   : > { %p5001_p1 = scmp.ne.s32.totalorder %s4006_s7, %s4002_s3  ;;  %p4279_p4 = por %p598_p11, %p70_p0 }
  0x4d   : > { %s5000_s21 = scalar_select %p4267_p12, 1, 0 }
  0x4e   : > { %p4275_p2 = por %p592_p10, %p5001_p1  ;;  %p657_p5 = scmp.lt.s32.totalorder %s4010_s28, 3 }
  0x4f   : > { %s5004_s25 = scalar_select %p4279_p4, 1, 0 }
  0x50   : > { %s5002_s24 = scalar_select %p4275_p2, 1, 0 }
  0x51   : > { %5005 = sst [smem:[#allocation25_spill]] %s5004_s25  ;;  %p4284_p7 = pnand %p3286_p13, %p657_p5 }
  0x52   : > { %5003 = sst [smem:[#allocation24_spill]] %s5002_s24  ;;  %s4013_s0 = smov [#allocation9]  }
  0x53   : > { %s5006_s26 = scalar_select %p4284_p7, 1, 0 }
  0x54   : > { %s711_s29 = sshll.u32 %s4013_s0, 4  ;;  %p3654_p9 = pneg %p4284_p7  ;;  %s712_s29 = int_to_ptr.vmem [resolvable:$true] %s711_s29 }
  0x55   : > { %s5007_s9 = sld [smem:[#allocation26_spill]]  ;;  %s744_s4 = scalar_lea.vmem [#allocation3], %s4213_s30 }
  0x56   : > { %p4298_p0 = pnand %p3654_p9, %p4950_p3  ;;  %s751_s28 = sshll.u32 %s744_s4, 4  ;;  %s4303_s28 = int_to_ptr.vmem [resolvable:$true] %s751_s28 }
  0x57   : > { %s5009_s27 = sld [smem:[#allocation29_spill]]  ;;  %s3811_s6 = scalar_lea.vmem %s712_s29, 512 }
  0x58   : > { %p3802_p10 = pneg %p4298_p0  ;;  %p3812_p11 = scmp.ne.s32.totalorder %s712_s29, %s3811_s6 }
  0x59   : > { %p3819_p5 = scmp.lt.s32.totalorder %s712_s29, %s712_s29  ;;  %p3820_p9 = scmp.lt.s32.totalorder %s3811_s6, %s3811_s6 }
  0x5a   : > { %p3814_p13 = pnand %p3812_p11, %p3802_p10 }
  0x5b   : > { %s4294_s10 = scalar_lea.hbm %s5007_s9, %s4216_s2  ;;  %p3821_p3 = por %p3820_p9, %p3819_p5 }
  0x5c   : > { %p3815_p1 = pneg %p3814_p13 }
  0x5d   : > { %s5010_s24 = smov %s5009_s27  ;;  %s4309_s17 = scalar_lea.hbm %s5009_s27, %s4216_s2 }
  0x5e   : > { %p3822_p4 = pnand %p3821_p3, %p3815_p1 }
  0x60   : > { %3825 = shalt.err (!%p3822_p4)
}
  0x61   : > { %s4014_s1 = smov 128   ;;  %s4015_s27 = smov 8  }
  0x62   : > { %3657 = dma.hbm_to_vmem [thread:$0]  (!%p4298_p0), %s4920_s18, 512, %s712_s29, [#allocation10], %s4014_s1, %s4014_s1, %s4015_s27  }
  0x63   : > { %s5011_s25 = sand.u32 1, %s4006_s7   ;;  %s3826_s16 = scalar_lea.hbm %s4294_s10, 128 }
  0x64   : > { %s741_s0 = scalar_lea.sflag [#allocation4], %s5011_s25  ;;  %p3827_p10 = scmp.ne.s32.totalorder %s4294_s10, %s3826_s16 }
  0x65   : > { %s3831_s15 = scalar_lea.hbm %s5007_s9, 256  ;;  %p3832_p11 = scmp.lt.s32.totalorder %s4294_s10, %s5007_s9 }
  0x66   : > { %p3829_p3 = pnand %p3827_p10, %p4236_p8  ;;  %p3833_p13 = scmp.lt.s32.totalorder %s3831_s15, %s3826_s16 }
  0x68   : > { %p3830_p4 = pneg %p3829_p3  ;;  %p3834_p1 = por %p3833_p13, %p3832_p11 }
  0x6a   : > { %p3835_p5 = pnand %p3834_p1, %p3830_p4 }
  0x6c   : > { %3838 = shalt.err (!%p3835_p5)
}
  0x6d   : > { %s3839_s19 = scalar_lea.vmem %s4303_s28, 128  ;;  %s4016_s29 = smov [#allocation3]  }
  0x6e   : > { %p3840_p0 = scmp.ne.s32.totalorder %s4303_s28, %s3839_s19  ;;  %s3844_s20 = sshll.u32 %s4016_s29, 4  ;;  %s3845_s20 = int_to_ptr.vmem [resolvable:$false] %s3844_s20 }
  0x6f   : > { %s3846_s1 = scalar_lea.vmem %s3845_s20, 256  ;;  %p3847_p3 = scmp.lt.s32.totalorder %s4303_s28, %s3845_s20 }
  0x70   : > { %p3842_p9 = pnand %p3840_p0, %p4236_p8  ;;  %p3848_p2 = scmp.lt.s32.totalorder %s3846_s1, %s3839_s19 }
  0x72   : > { %p3843_p10 = pneg %p3842_p9  ;;  %p3849_p12 = por %p3848_p2, %p3847_p3 }
  0x74   : > { %p3850_p7 = pnand %p3849_p12, %p3843_p10 }
  0x76   : > { %3853 = shalt.err (!%p3850_p7)
}
  0x77   : > { %3661 = dma.hbm_to_vmem [thread:$0]  (!%p4218_p6), %s4294_s10, 128, %s4303_s28, %s741_s0  }
  0x78   : > { %s788_s11 = scalar_lea.vmem [#allocation8], %s4213_s30  ;;  %s3854_s15 = scalar_lea.hbm %s4309_s17, 128 }
  0x79   : > { %s795_s14 = sshll.u32 %s788_s11, 4  ;;  %p3855_p4 = scmp.ne.s32.totalorder %s4309_s17, %s3854_s15  ;;  %s796_s14 = int_to_ptr.vmem [resolvable:$true] %s795_s14 }
  0x7a   : > { %s3859_s2 = scalar_lea.hbm %s5010_s24, 256  ;;  %p3860_p12 = scmp.lt.s32.totalorder %s4309_s17, %s5010_s24 }
  0x7b   : > { %p3857_p11 = pnand %p3855_p4, %p4236_p8  ;;  %p3861_p7 = scmp.lt.s32.totalorder %s3859_s2, %s3854_s15 }
  0x7d   : > { %p3858_p2 = pneg %p3857_p11  ;;  %p3862_p13 = por %p3861_p7, %p3860_p12 }
  0x7f   : > { %p3863_p1 = pnand %p3862_p13, %p3858_p2 }
  0x81   : > { %3866 = shalt.err (!%p3863_p1)
}
  0x82   : > { %s3867_s28 = scalar_lea.vmem %s796_s14, 128  ;;  %s4017_s30 = smov [#allocation8]  }
  0x83   : > { %p3868_p5 = scmp.ne.s32.totalorder %s796_s14, %s3867_s28  ;;  %s3872_s10 = sshll.u32 %s4017_s30, 4  ;;  %s3873_s10 = int_to_ptr.vmem [resolvable:$false] %s3872_s10 }
  0x84   : > { %s3874_s0 = scalar_lea.vmem %s3873_s10, 256  ;;  %p3875_p10 = scmp.lt.s32.totalorder %s796_s14, %s3873_s10 }
  0x85   : > { %p3870_p0 = pnand %p3868_p5, %p4236_p8  ;;  %p3876_p3 = scmp.lt.s32.totalorder %s3874_s0, %s3867_s28 }
  0x87   : > { %p3871_p9 = pneg %p3870_p0  ;;  %p3877_p4 = por %p3876_p3, %p3875_p10 }
  0x89   : > { %p3878_p11 = pnand %p3877_p4, %p3871_p9 }
  0x8b   : > { %3881 = shalt.err (!%p3878_p11)
}
  0x8c   : > { %3667 = dma.hbm_to_vmem [thread:$0]  (!%p4218_p6), %s4309_s17, 128, %s796_s14, %s4230_s8  }
  0x8d   : > { %p5012_p2 = scmp.ne.s32.totalorder %s5006_s26, 0 }
  0x8e   : > { %s4361_s23 = sand.u32 (!%p5012_p2), 1, %s4002_s3   ;;  %p5013_p8 = scmp.ne.s32.totalorder (!%p5012_p2), %s5000_s21, 0 }
  0x8f   : > { %804 = sbr.rel (%p5012_p2) target bundleno = 5250 (0x1482), region = 116  ;;  %s4364_s6 = sshll.u32 (!%p5012_p2), %s4361_s23, 3 }
  0x90   : > { %s807_s19 = scalar_lea.sflag (!%p5012_p2), [#allocation4], %s4361_s23  ;;  %s810_s29 = scalar_lea.vmem (!%p5012_p2), [#allocation3], %s4364_s6 }
  0x94   : > { %3977 = dma.done.wait (%p5013_p8), %s807_s19, 128  }
  0x95   : > { %3979 = vsyncadd (%p5013_p8), %s807_s19, 4294967168  ;;  %s4956_s17 = sand.u32 1, %s4256_s22   ;;  %s819_s5 = scalar_lea.vmem [#allocation6], %s4364_s6 }
  0x96   : > { %s816_s8 = scalar_lea.sflag [#allocation7], %s4956_s17 }
  0x97   : > { %3981 = dma.done.wait (%p5013_p8), %s816_s8, 256  }
  0x98   : > { %3983 = vsyncadd (%p5013_p8), %s816_s8, 4294967040  ;;  %s828_s26 = scalar_lea.vmem [#allocation8], %s4364_s6  ;;  %p5014_p6 = scmp.eq.s32.totalorder %s4256_s22, 0 }
  0x9a   : > { %3985 = dma.done.wait (%p5014_p6), [#allocation10], 512   ;;  %p5015_p12 = pmov %p5014_p6 }
  0x9b   : > { %v4018_v0 = vmov 0.0   ;;  %vm4019_vm0 = vmmov 0   ;;  %s5016_s1 = sld [smem:[#allocation30_spill]]  ;;  %v4405_v5 = vld [vmem:[%s810_s29] sm:$0xff]  ;;  %vm945_vm1 = vcmask 261120   ;;  %s4020_s30 = smov 120  }
  0x9c   : > { %3987 = vsyncadd (%p5015_p12), [#allocation10], 4294966784  ;;  %3457 = vmatprep.subr.mxu1 %v4018_v0  ;;  %3465 = vmatprep.mubr.msk.f32.mxu1 %vm4019_vm0, %v4018_v0  ;;  %s5017_s28 = sld [smem:[#allocation31_spill]]  ;;  %s4021_s10 = smov 96   ;;  %vm1028_vm2 = vcmask 64512   ;;  %v1019_v17 = vld [vmem:[%s819_s5] sm:$0xff] }
  0x9d   : > { %3478 = vmatprep.subr.mxu0 %v4018_v0  ;;  %3480 = vmatprep.mubr.msk.f32.mxu0 %vm4019_vm0, %v4018_v0  ;;  %s4022_s0 = smov 80   ;;  %s4023_s19 = smov 88   ;;  %vm1363_vm3 = vcmask 130112   ;;  %vm1536_vm4 = vcmask 195712   ;;  %vm1709_vm5 = vcmask 261312   ;;  %vm2083_vm6 = vcmask 97280  }
  0x9e   : > { %s4961_s29 = smov 72   ;;  %s4025_s8 = smov 112   ;;  %vm2104_vm7 = vcmask 1043456   ;;  %vm2928_vm8 = vcmask 523264  }
  0x9f   : > { %s4963_s21 = smov 104   ;;  %s4027_s5 = smov 56  }
  0xa0   : > { %s4028_s20 = smov 64   ;;  %s4029_s11 = smov 48  }
  0xa1   : > { %v937_v1 = vld [vmem:[%s5016_s1 + $0x18] sm:$0xff]  ;;  %v936_v2 = vld [vmem:[%s5016_s1 + $0x10] sm:$0xff]  ;;  %v935_v3 = vld [vmem:[%s5016_s1 + $0x8] sm:$0xff]  ;;  %s4030_s14 = smov 40   ;;  %s4965_s15 = sshll.u32 %s4361_s23, 5 }
  0xa2   : > { %3458 = vmatpush3.msra.mxu1 %v937_v1  ;;  %v934_v4 = vld [vmem:[%s5016_s1] sm:$0xff]  ;;  %s4471_s16 = scalar_lea.vmem [#allocation12], %s4965_s15  ;;  %s4959_s27 = smov 8  }
  0xa3   : > { %3459 = vmatprep.subr.mxu1 %v4018_v0  ;;  %v3305_v6 = vld [vmem:[%s5017_s28] ss:$0 sm:$0xff]  ;;  %s5018_s25 = sld [smem:[#allocation32_spill]]  ;;  %s4958_s2 = smov 16  }
  0xa4   : > { %3460 = vmatpush3.msra.mxu1 %v936_v2  ;;  %s4957_s4 = smov 24   ;;  %p926_p7 = scmp.lt.s32.totalorder %s4256_s22, 1 }
  0xa5   : > { %3461 = vmatprep.subr.mxu1 %v4018_v0  ;;  %s5031_s17 = smov 24  }
  0xa6   : > { %3462 = vmatpush3.msra.mxu1 %v935_v3  ;;  %s927_s28 = scalar_select %p926_p7, %s4256_s22, 1 }
  0xa7   : > { %3463 = vmatprep.subr.mxu1 %v4018_v0 }
  0xa8   : > { %3464 = vmatpush3.msra.mxu1 %v934_v4 }
  0xa9   : > { %3466 = vmatmul.mubr.msk.f32.vlgmr.msra.gmra.mxu1 %vm945_vm1, %v4405_v5  ;;  %3468 = vmatprep.subr.mxu1 %v4018_v0 }
  0xaa   : > { %3470 = vmatprep.mubr.msk.f32.mxu1 %vm4019_vm0, %v4018_v0 }
 0x169   : > { %v1015_v7 = vpop.f32.mrf.mxu1 }
 0x16a   : > { %v4416_v8 = vadd.f32 %v3305_v6, %v1015_v7 }
 0x16b   : > { %v3467_v9 = vpop.f32.mrf.mxu1 }
 0x16c   : > { %1192 = vrot.lane.b32.xlu1 %v4416_v8, %s4020_s30  ;;  %1026 = vrot.lane.b32.xlu0 %v4416_v8, %s4021_s10 }
 0x170   : > { %1367 = vrot.lane.b32.xlu1 %v4416_v8, %s4022_s0  ;;  %1194 = vrot.lane.b32.xlu0 %v4416_v8, %s4023_s19 }
 0x174   : > { %1540 = vrot.lane.b32.xlu1 %v4416_v8, %s4961_s29  ;;  %1365 = vrot.lane.b32.xlu0 %v4416_v8, %s4025_s8  ;;  %s5023_s29 = sld [smem:[#allocation35_spill]] }
 0x178   : > { %1538 = vrot.lane.b32.xlu0 %v4416_v8, %s4963_s21  ;;  %s5020_s21 = sld [smem:[#allocation27_spill]] }
 0x1de   : > { %v1193_v10 = vpop.permute.xlu1 %1192  ;;  %v1027_v11 = vpop.permute.xlu0 %1026 }
 0x1df   : > { %3469 = vmatpush3.xpose.msk.msra.mxu1 %vm1028_vm2, %v1027_v11 }
 0x1e0   : > { %3473 = vmatprep.subr.mxu1 %v4018_v0 }
 0x1e2   : > { %3471 = vmatmul.mubr.msk.f32.vlgmr.msra.gmra.mxu1 %vm1028_vm2, %v4416_v8  ;;  %v1195_v12 = vpop.permute.xlu0 %1194  ;;  %v1368_v13 = vpop.permute.xlu1 %1367 }
 0x1e3   : > { %3479 = vmatpush3.xpose.msk.msra.mxu0 %vm1028_vm2, %v1195_v12  ;;  %3475 = vmatprep.mubr.msk.f32.mxu1 %vm4019_vm0, %v4018_v0  ;;  %v1023_v12 = vld [vmem:[%s5018_s25 + $0x18] sm:$0xff] }
 0x1e4   : > { %3488 = vmatprep.subr.mxu0 %v4018_v0 }
 0x1e6   : > { %3481 = vmatmul.mubr.msk.f32.vlgmr.msra.gmra.mxu0 %vm1028_vm2, %v1193_v10  ;;  %v1366_v14 = vpop.permute.xlu0 %1365  ;;  %v1541_v15 = vpop.permute.xlu1 %1540 }
 0x1e7   : > { %3489 = vmatpush3.xpose.msk.msra.mxu0 %vm1028_vm2, %v1368_v13  ;;  %3490 = vmatprep.mubr.msk.f32.mxu0 %vm4019_vm0, %v4018_v0  ;;  %v1022_v13 = vld [vmem:[%s5018_s25 + $0x10] sm:$0xff] }
 0x1e8   : > { %3498 = vmatprep.subr.mxu0 %v4018_v0 }
 0x1ea   : > { %3491 = vmatmul.mubr.msk.f32.vlgmr.msra.gmra.mxu0 %vm1028_vm2, %v1366_v14  ;;  %v1539_v16 = vpop.permute.xlu0 %1538  ;;  %v1021_v14 = vld [vmem:[%s5018_s25 + $0x8] sm:$0xff] }
 0x1eb   : > { %3499 = vmatpush3.xpose.msk.msra.mxu0 %vm1028_vm2, %v1541_v15  ;;  %3500 = vmatprep.mubr.msk.f32.mxu0 %vm4019_vm0, %v4018_v0  ;;  %v1020_v15 = vld [vmem:[%s5018_s25] sm:$0xff] }
 0x1ec   : > { %3508 = vmatprep.subr.mxu0 %v4018_v0 }
 0x1ee   : > { %3501 = vmatmul.mubr.msk.f32.vlgmr.msra.gmra.mxu0 %vm1028_vm2, %v1539_v16 }
 0x1ef   : > { %3516 = vmatprep.mubr.msk.f32.mxu0 %vm4019_vm0, %v4018_v0  ;;  %3509 = vmatpush3.msra.mxu0 %v1023_v12 }
 0x1f0   : > { %3510 = vmatprep.subr.mxu0 %v4018_v0 }
 0x1f1   : > { %3511 = vmatpush3.msra.mxu0 %v1022_v13 }
 0x1f2   : > { %3512 = vmatprep.subr.mxu0 %v4018_v0 }
 0x1f3   : > { %3513 = vmatpush3.msra.mxu0 %v1021_v14 }
 0x1f4   : > { %3514 = vmatprep.subr.mxu0 %v4018_v0 }
 0x1f5   : > { %3515 = vmatpush3.msra.mxu0 %v1020_v15 }
 0x2a2   : > { %v1099_v18 = vpop.f32.mrf.mxu1 }
 0x2a3   : > { %v1100_v19 = vadd.f32 %v1099_v18, %v1019_v17 }
 0x2a4   : > { %v3472_v20 = vpop.f32.mrf.mxu1 }
 0x2a5   : > { %v1103_v21 = vsel %vm1028_vm2, %v1100_v19, -inf }
 0x2a6   : > { %v1266_v22 = vpop.f32.mrf.mxu0  ;;  %1104 = vmax.xlane.f32.xlu1 %v1103_v21 }
 0x2a7   : > { %v1267_v23 = vadd.f32 %v1266_v22, %v1019_v17 }
 0x2a8   : > { %v3482_v24 = vpop.f32.mrf.mxu0 }
 0x2a9   : > { %v1270_v25 = vsel %vm1028_vm2, %v1267_v23, -inf }
 0x2aa   : > { %1271 = vmax.xlane.f32.xlu0 %v1270_v25  ;;  %v1439_v26 = vpop.f32.mrf.mxu0 }
 0x2ab   : > { %v1440_v27 = vadd.f32 %v1439_v26, %v1019_v17 }
 0x2ac   : > { %v3492_v28 = vpop.f32.mrf.mxu0 }
 0x2ad   : > { %v1443_v29 = vsel %vm1028_vm2, %v1440_v27, -inf }
 0x2ae   : > { %1444 = vmax.xlane.f32.xlu0 %v1443_v29  ;;  %v1612_v30 = vpop.f32.mrf.mxu0 }
 0x2af   : > { %v1613_v31 = vadd.f32 %v1612_v30, %v1019_v17 }
 0x2b0   : > { %v3502_v32 = vpop.f32.mrf.mxu0 }
 0x2b1   : > { %v1616_v33 = vsel %vm1028_vm2, %v1613_v31, -inf }
 0x2b2   : > { %1617 = vmax.xlane.f32.xlu1 %v1616_v33 }
 0x2c3   : > { %1283 = vrot.lane.b32.xlu1 %v4416_v8, %s4027_s5  ;;  %s5019_s5 = sld [smem:[#allocation33_spill]] }
 0x2c9   : > { %v3322_v24 = vld [vmem:[%s5019_s5] ss:$0 sm:$0xff]  ;;  %s5033_s5 = sld [smem:[#allocation43_spill]] }
 0x32f   : > { %v1105_v34 = vpop.xlane.xlu1 %1104 }
 0x330   : > { %v1106_v35 = vsub.f32 %v1100_v19, %v1105_v34 }
 0x332   : > { %v1107_v36 = vmul.f32 1.442695, %v1106_v35  ;;  %v1909_v35 = vld [vmem:[%s4914_s12 + $0x18] sm:$0xff] }
 0x333   : > { %v1272_v37 = vpop.xlane.xlu0 %1271  ;;  %3530 = vmatprep.subr.mxu0 %v1909_v35 }
 0x334   : > { %3734 = vpow2.f32 %v1107_v36  ;;  %v1273_v38 = vsub.f32 %v1267_v23, %v1272_v37  ;;  %v1907_v36 = vld [vmem:[%s4914_s12 + $0x8] sm:$0xff]  ;;  %v1906_v37 = vld [vmem:[%s4914_s12] sm:$0xff] }
 0x336   : > { %v1274_v39 = vmul.f32 1.442695, %v1273_v38 }
 0x337   : > { %v1445_v49 = vpop.xlane.xlu0 %1444 }
 0x338   : > { %3736 = vpow2.f32 %v1274_v39  ;;  %v1446_v50 = vsub.f32 %v1440_v27, %v1445_v49 }
 0x33a   : > { %v1447_v51 = vmul.f32 1.442695, %v1446_v50  ;;  %v3325_v50 = vld [vmem:[%s5023_s29] ss:$0 sm:$0xff] }
 0x33b   : > { %v1618_v40 = vpop.xlane.xlu1 %1617 }
 0x33c   : > { %v1619_v41 = vsub.f32 %v1613_v31, %v1618_v40 }
 0x33e   : > { %v1620_v42 = vmul.f32 1.442695, %v1619_v41 }
 0x33f   : > { %v1284_v54 = vpop.permute.xlu1 %1283 }
 0x340   : > { %3738 = vpow2.f32 %v1620_v42 }
 0x341   : > { %v3735_v43 = vpop.eup %3734  ;;  %3740 = vpow2.f32 %v1447_v51 }
 0x342   : > { %v1109_v44 = vsel %vm1028_vm2, %v3735_v43, 0.0 }
 0x343   : > { %1110 = vadd.xlane.f32.xlu0 %v1109_v44 }
 0x345   : > { %v3737_v45 = vpop.eup %3736 }
 0x346   : > { %v1276_v46 = vsel %vm1028_vm2, %v3737_v45, 0.0 }
 0x347   : > { %1277 = vadd.xlane.f32.xlu1 %v1276_v46 }
 0x34d   : > { %v3739_v47 = vpop.eup %3738 }
 0x34e   : > { %v1622_v48 = vsel %vm1028_vm2, %v3739_v47, 0.0  ;;  %v3741_v52 = vpop.eup %3740 }
 0x34f   : > { %1623 = vadd.xlane.f32.xlu1 %v1622_v48  ;;  %v1449_v53 = vsel %vm1028_vm2, %v3741_v52, 0.0 }
 0x359   : > { %1115 = vrot.lane.b32.xlu0 %v4416_v8, %s4028_s20  ;;  %s5035_s20 = sld [smem:[#allocation41_spill]] }
 0x360   : > { %1456 = vrot.lane.b32.xlu1 %v4416_v8, %s4029_s11  ;;  %s5022_s11 = sld [smem:[#allocation34_spill]] }
 0x366   : > { %v3324_v48 = vld [vmem:[%s5022_s11] ss:$0 sm:$0xff]  ;;  %s5030_s11 = sld [smem:[#allocation38_spill]] }
 0x378   : > { %1450 = vadd.xlane.f32.xlu0 %v1449_v53  ;;  %v3328_v53 = vld [vmem:[%s4915_s13] ss:$0 sm:$0xff] }
 0x38e   : > { %1629 = vrot.lane.b32.xlu0 %v4416_v8, %s4030_s14  ;;  %s5021_s14 = sld [smem:[#allocation36_spill]] }
 0x394   : > { %v1825_v40 = vld [vmem:[%s5021_s14 + $0x18] sm:$0xff]  ;;  %v1824_v41 = vld [vmem:[%s5021_s14 + $0x10] sm:$0xff]  ;;  %v1823_v42 = vld [vmem:[%s5021_s14 + $0x8] sm:$0xff] }
 0x3cc   : > { %v1111_v55 = vpop.xlane.xlu0 %1110 }
 0x3cd   : > { %3742 = vrcp.f32 %v1111_v55 }
 0x3d0   : > { %v1116_v56 = vpop.permute.xlu0 %1115  ;;  %v1278_v57 = vpop.xlane.xlu1 %1277 }
 0x3d1   : > { %3744 = vrcp.f32 %v1278_v57  ;;  %3474 = vmatpush3.msra.mxu1 %v1116_v56 }
 0x3d2   : > { %3483 = vmatprep.subr.mxu1 %v4018_v0 }
 0x3d8   : > { %v1624_v58 = vpop.xlane.xlu1 %1623 }
 0x3d9   : > { %3746 = vrcp.f32 %v1624_v58 }
 0x3da   : > { %v3743_v59 = vpop.eup %3742 }
 0x3db   : > { %v1113_v60 = vmul.f32 %v3743_v59, %v3735_v43  ;;  %v1822_v43 = vld [vmem:[%s5021_s14] sm:$0xff] }
 0x3dc   : > { %v1457_v63 = vpop.permute.xlu1 %1456 }
 0x3dd   : > { %1114 = vst.msk [vmem:[%s4471_s16] sm:$0xff] %vm1028_vm2, %v1113_v60  ;;  %3476 = vmatmul.mubr.msk.f32.vlgmr.msra.gmra.mxu1 %vm1028_vm2, %v1113_v60 }
 0x3de   : > { %v3745_v61 = vpop.eup %3744  ;;  %3484 = vmatpush3.msra.mxu1 %v1284_v54  ;;  %3485 = vmatprep.mubr.msk.f32.mxu1 %vm4019_vm0, %v4018_v0 }
 0x3df   : > { %3493 = vmatprep.subr.mxu1 %v4018_v0  ;;  %v1280_v62 = vmul.f32 %v3745_v61, %v3737_v45 }
 0x3e1   : > { %3312 = vst.msk [vmem:[%s4471_s16 + $0x8] sm:$0xff] %vm1028_vm2, %v1280_v62  ;;  %3486 = vmatmul.mubr.msk.f32.vlgmr.msra.gmra.mxu1 %vm1028_vm2, %v1280_v62 }
 0x3e2   : > { %3494 = vmatpush3.msra.mxu1 %v1457_v63  ;;  %3495 = vmatprep.mubr.msk.f32.mxu1 %vm4019_vm0, %v4018_v0 }
 0x3e3   : > { %3503 = vmatprep.subr.mxu1 %v4018_v0 }
 0x3e6   : > { %v3747_v1 = vpop.eup %3746 }
 0x3e7   : > { %v1626_v2 = vmul.f32 %v3747_v1, %v3739_v47 }
 0x3e9   : > { %3320 = vst.msk [vmem:[%s4471_s16 + $0x18] sm:$0xff] %vm1028_vm2, %v1626_v2 }
 0x401   : > { %v1451_v3 = vpop.xlane.xlu0 %1450 }
 0x402   : > { %3748 = vrcp.f32 %v1451_v3 }
 0x405   : > { %v1630_v7 = vpop.permute.xlu0 %1629 }
 0x40f   : > { %v3749_v4 = vpop.eup %3748 }
 0x410   : > { %v1453_v6 = vmul.f32 %v3749_v4, %v3741_v52 }
 0x412   : > { %3316 = vst.msk [vmem:[%s4471_s16 + $0x10] sm:$0xff] %vm1028_vm2, %v1453_v6  ;;  %3496 = vmatmul.mubr.msk.f32.vlgmr.msra.gmra.mxu1 %vm1028_vm2, %v1453_v6 }
 0x413   : > { %3504 = vmatpush3.msra.mxu1 %v1630_v7  ;;  %3505 = vmatprep.mubr.msk.f32.mxu1 %vm4019_vm0, %v4018_v0 }
 0x414   : > { %3519 = vmatprep.subr.mxu1 %v4018_v0 }
 0x416   : > { %3506 = vmatmul.mubr.msk.f32.vlgmr.msra.gmra.mxu1 %vm1028_vm2, %v1626_v2  ;;  %v4612_v2 = vld [vmem:[%s828_s26] sm:$0xff]  ;;  %s5025_s26 = sshll.u32 %s4361_s23, 5 }
 0x417   : > { %3527 = vmatprep.mubr.msk.f32.mxu1 %vm4019_vm0, %v4018_v0  ;;  %3520 = vmatpush3.msra.mxu1 %v1825_v40 }
 0x418   : > { %3521 = vmatprep.subr.mxu1 %v4018_v0 }
 0x419   : > { %3522 = vmatpush3.msra.mxu1 %v1824_v41 }
 0x41a   : > { %3523 = vmatprep.subr.mxu1 %v4018_v0 }
 0x41b   : > { %3524 = vmatpush3.msra.mxu1 %v1823_v42 }
 0x41c   : > { %3525 = vmatprep.subr.mxu1 %v4018_v0 }
 0x41d   : > { %3526 = vmatpush3.msra.mxu1 %v1822_v43 }
 0x41e   : > { %3541 = vmatprep.subr.mxu1 %v4018_v0 }
 0x49d   : > { %v1187_v8 = vpop.f32.mrf.mxu1 }
 0x49e   : > { %1191 = vst.msk [vmem:[#allocation2] sm:$0xff] %vm1028_vm2, %v1187_v8 }
 0x49f   : > { %v3477_v9 = vpop.f32.mrf.mxu1 }
 0x4a1   : > { %v1355_v10 = vpop.f32.mrf.mxu1 }
 0x4a2   : > { %1360 = vrot.lane.b32.xlu1 %v1355_v10, %s4959_s27 }
 0x4a3   : > { %v3487_v11 = vpop.f32.mrf.mxu1 }
 0x4d2   : > { %v1528_v16 = vpop.f32.mrf.mxu1 }
 0x4d3   : > { %1533 = vrot.lane.b32.xlu0 %v1528_v16, %s4958_s2  ;;  %s3374_s2 = sshll.u32 %s927_s28, 4  ;;  %s5024_s28 = sld [smem:[#allocation37_spill]] }
 0x4d4   : > { %v3497_v17 = vpop.f32.mrf.mxu1  ;;  %s930_s15 = scalar_lea.vmem %s5020_s21, %s3374_s2  ;;  %s5039_s21 = sld [smem:[#allocation48_spill]] }
 0x4d5   : > { %v932_v38 = vld [vmem:[%s930_s15] sm:$0xff]  ;;  %v933_v39 = vld [vmem:[%s930_s15 + $0x8] sm:$0xf]  ;;  %s3070_s2 = sshll.u32 %s4471_s16, 4  ;;  %s4798_s2 = int_to_ptr.vmem [resolvable:$true] %s3070_s2 }
 0x4d6   : > { %v1701_v18 = vpop.f32.mrf.mxu1 }
 0x4d7   : > { %1706 = vrot.lane.b32.xlu1 %v1701_v18, %s4957_s4  ;;  %s4966_s4 = sshll.u32 %s4256_s22, 9 }
 0x4d8   : > { %v3507_v19 = vpop.f32.mrf.mxu1 }
 0x4d9   : > { %v3326_v58 = vld [vmem:[%s5024_s28] ss:$0 sm:$0xff] }
 0x4da   : > { %s4795_s15 = scalar_lea.hbm %s5039_s21, %s4966_s4 }
 0x514   : > { %v1361_v20 = vpop.permute.xlu1 %1360 }
 0x515   : > { %1364 = vst.msk [vmem:[#allocation2] sm:$0xff] %vm1363_vm3, %v1361_v20 }
 0x545   : > { %v1534_v21 = vpop.permute.xlu0 %1533 }
 0x546   : > { %1537 = vst.msk [vmem:[#allocation2] sm:$0xff] %vm1536_vm4, %v1534_v21 }
 0x549   : > { %v1707_v22 = vpop.permute.xlu1 %1706 }
 0x54a   : > { %1710 = vst.msk [vmem:[#allocation2] sm:$0xff] %vm1709_vm5, %v1707_v22 }
 0x551   : > { %v1711_v23 = vld [vmem:[#allocation2] sm:$0xff] }
 0x552   : > { %3517 = vmatmul.mubr.msk.f32.vlgmr.msra.gmra.mxu0 %vm945_vm1, %v1711_v23 }
 0x553   : > { %3531 = vmatpush3.msra.mxu0 %v1909_v35  ;;  %3538 = vmatprep.mubr.msk.f32.mxu0 %vm945_vm1, %v932_v38 }
 0x612   : > { %v1787_v25 = vpop.f32.mrf.mxu0 }
 0x613   : > { %v1788_v26 = vadd.f32 %v3322_v24, %v1787_v25 }
 0x614   : > { %v3518_v27 = vpop.f32.mrf.mxu0 }
 0x615   : > { %v1791_v28 = vadd.f32 %v1788_v26, %v4405_v5  ;;  %v1908_v5 = vld [vmem:[%s4914_s12 + $0x10] sm:$0xff] }
 0x616   : > { %3532 = vmatprep.subr.mxu0 %v1908_v5 }
 0x617   : > { %v1794_v29 = vsel %vm945_vm1, %v1791_v28, 0.0  ;;  %3533 = vmatpush3.msra.mxu0 %v1908_v5 }
 0x618   : > { %1795 = vadd.xlane.f32.xlu0 %v1794_v29  ;;  %3534 = vmatprep.subr.mxu0 %v1907_v36 }
 0x619   : > { %3535 = vmatpush3.msra.mxu0 %v1907_v36 }
 0x61a   : > { %3536 = vmatprep.subr.mxu0 %v1906_v37 }
 0x61b   : > { %3537 = vmatpush3.msra.mxu0 %v1906_v37 }
 0x61c   : > { %3539 = vmatmul.mubr.msk.f32.vlgmr.msra.gmra.mxu0 %vm945_vm1, %v933_v39  ;;  %3548 = vmatprep.subr.mxu0 %v4018_v0 }
 0x61d   : > { %3552 = vmatprep.mubr.msk.f32.mxu0 %vm4019_vm0, %v4018_v0 }
 0x6a1   : > { %v1796_v30 = vpop.xlane.xlu0 %1795 }
 0x6a2   : > { %v1798_v31 = vmul.f32 0.03125, %v1796_v30 }
 0x6a4   : > { %v1799_v32 = vsub.f32 %v1791_v28, %v1798_v31 }
 0x6a6   : > { %v1800_v33 = vmul.f32 %v1799_v32, %v1799_v32 }
 0x6a8   : > { %v1801_v34 = vsel %vm945_vm1, %v1800_v33, 0.0 }
 0x6a9   : > { %1802 = vadd.xlane.f32.xlu1 %v1801_v34 }
 0x6dc   : > { %v3540_v54 = vpop.f32.mrf.mxu0 }
 0x6dd   : > { %v4578_v55 = vadd.f32 %v3540_v54, %v3328_v53 }
 0x6de   : > { %v1989_v56 = vpop.f32.mrf.mxu0 }
 0x6df   : > { %2182 = vrot.lane.b32.xlu0 %v4578_v55, %s4020_s30  ;;  %v4584_v57 = vadd.f32 %v3328_v53, %v1989_v56 }
 0x6e1   : > { %2180 = vrot.lane.b32.xlu1 %v4584_v57, %s4020_s30 }
 0x732   : > { %v1803_v44 = vpop.xlane.xlu1 %1802 }
 0x733   : > { %v1804_v45 = vmul.f32 0.03125, %v1803_v44 }
 0x735   : > { %v1805_v46 = vadd.f32 1e-05, %v1804_v45 }
 0x737   : > { %3750 = vrsqrt.f32 %v1805_v46 }
 0x744   : > { %v3751_v47 = vpop.eup %3750 }
 0x745   : > { %v1807_v49 = vmul.f32 %v3751_v47, %v1799_v32 }
 0x747   : > { %v1814_v51 = vmul.f32 %v3324_v48, %v1807_v49 }
 0x749   : > { %v4569_v52 = vadd.f32 %v3325_v50, %v1814_v51 }
 0x74b   : > { %3528 = vmatmul.mubr.msk.f32.vlgmr.msra.gmra.mxu1 %vm945_vm1, %v4569_v52 }
 0x74c   : > { %3545 = vmatprep.mubr.msk.f32.mxu1 %vm4019_vm0, %v4018_v0  ;;  %3542 = vmatpush3.xpose.msk.msra.mxu1 %vm1028_vm2, %v4578_v55 }
 0x74d   : > { %3543 = vmatprep.subr.mxu1 %v4018_v0 }
 0x750   : > { %3544 = vmatpush3.xpose.msk.msra.mxu1 %vm1028_vm2, %v4584_v57 }
 0x751   : > { %3555 = vmatprep.subr.mxu1 %v4018_v0  ;;  %v2183_v61 = vpop.permute.xlu0 %2182 }
 0x753   : > { %v2181_v63 = vpop.permute.xlu1 %2180 }
 0x80b   : > { %v1902_v59 = vpop.f32.mrf.mxu1 }
 0x80c   : > { %v4595_v60 = vadd.f32 %v3326_v58, %v1902_v59 }
 0x80d   : > { %v3529_v62 = vpop.f32.mrf.mxu1 }
 0x80e   : > { %2178 = vrot.lane.b32.xlu0 %v4595_v60, %s4020_s30  ;;  %3546 = vmatmul.mubr.msk.f32.vlgmr.msra.gmra.mxu1 %vm1028_vm2, %v4595_v60  ;;  %s4641_s30 = scalar_lea.vmem [#allocation14], %s5025_s26  ;;  %s5036_s26 = sld [smem:[#allocation42_spill]] }
 0x80f   : > { %3556 = vmatpush3.xpose.msk.msra.mxu1 %vm1028_vm2, %v2183_v61  ;;  %3559 = vmatprep.mubr.msk.f32.mxu1 %vm4019_vm0, %v4018_v0 }
 0x810   : > { %3557 = vmatprep.subr.mxu1 %v4018_v0 }
 0x813   : > { %3558 = vmatpush3.xpose.msk.msra.mxu1 %vm1028_vm2, %v2181_v63 }
 0x814   : > { %3576 = vmatprep.subr.mxu1 %v4018_v0 }
 0x880   : > { %v2179_v1 = vpop.permute.xlu0 %2178 }
 0x881   : > { %3560 = vmatmul.mubr.msk.f32.vlgmr.msra.gmra.mxu1 %vm1028_vm2, %v2179_v1 }
 0x882   : > { %3580 = vmatprep.mubr.msk.f32.mxu1 %vm4019_vm0, %v4018_v0 }
 0x8ce   : > { %v2079_v3 = vpop.f32.mrf.mxu1 }
 0x8cf   : > { %v2080_v4 = vadd.f32 %v2079_v3, %v4612_v2 }
 0x8d0   : > { %v3547_v6 = vpop.f32.mrf.mxu1 }
 0x8d1   : > { %v2084_v7 = vsel %vm2083_vm6, %v2080_v4, -inf }
 0x8d2   : > { %2085 = vmax.xlane.f32.xlu1 %v2084_v7 }
 0x8e3   : > { %2096 = vrot.lane.b32.xlu1 %v4584_v57, %s4021_s10 }
 0x8e7   : > { %2275 = vrot.lane.b32.xlu1 %v4578_v55, %s4023_s19 }
 0x8eb   : > { %2362 = vrot.lane.b32.xlu1 %v4578_v55, %s4025_s8 }
 0x941   : > { %v2256_v8 = vpop.f32.mrf.mxu1 }
 0x942   : > { %v2257_v9 = vadd.f32 %v2256_v8, %v4612_v2 }
 0x943   : > { %v3561_v10 = vpop.f32.mrf.mxu1 }
 0x944   : > { %v2260_v11 = vsel %vm2083_vm6, %v2257_v9, -inf }
 0x945   : > { %2261 = vmax.xlane.f32.xlu0 %v2260_v11 }
 0x95b   : > { %2098 = vrot.lane.b32.xlu0 %v4578_v55, %s4021_s10  ;;  %v2086_v12 = vpop.xlane.xlu1 %2085  ;;  %s5026_s10 = smov 104  }
 0x95c   : > { %v2087_v13 = vsub.f32 %v2080_v4, %v2086_v12 }
 0x95e   : > { %v2088_v14 = vmul.f32 1.442695, %v2087_v13  ;;  %v2001_v13 = vld [vmem:[%s5030_s11 + $0x10] sm:$0xff] }
 0x95f   : > { %v2097_v21 = vpop.permute.xlu1 %2096 }
 0x960   : > { %3752 = vpow2.f32 %v2088_v14  ;;  %v2000_v14 = vld [vmem:[%s5030_s11 + $0x8] sm:$0xff] }
 0x963   : > { %v2276_v27 = vpop.permute.xlu1 %2275 }
 0x967   : > { %v2363_v29 = vpop.permute.xlu1 %2362 }
 0x96d   : > { %v3753_v15 = vpop.eup %3752 }
 0x96e   : > { %v2090_v16 = vsel %vm2083_vm6, %v3753_v15, 0.0 }
 0x97a   : > { %2091 = vadd.xlane.f32.xlu0 %v2090_v16 }
 0x990   : > { %2273 = vrot.lane.b32.xlu0 %v4584_v57, %s4023_s19  ;;  %s5028_s19 = smov 8  }
 0x994   : > { %2360 = vrot.lane.b32.xlu0 %v4584_v57, %s4025_s8 }
 0x9ce   : > { %v2262_v17 = vpop.xlane.xlu0 %2261 }
 0x9cf   : > { %v2263_v18 = vsub.f32 %v2257_v9, %v2262_v17 }
 0x9d1   : > { %v2264_v19 = vmul.f32 1.442695, %v2263_v18 }
 0x9d2   : > { %v2099_v20 = vpop.permute.xlu0 %2098 }
 0x9d3   : > { %3754 = vpow2.f32 %v2264_v19  ;;  %3549 = vmatpush3.msk.msra.mxu0 %vm2104_vm7, %v2099_v20 }
 0x9d4   : > { %3550 = vmatprep.subr.mxu0 %v4018_v0 }
 0x9d5   : > { %3551 = vmatpush3.msra.mxu0 %v2097_v21 }
 0x9d6   : > { %3562 = vmatprep.subr.mxu0 %v4018_v0 }
 0x9e0   : > { %v3755_v22 = vpop.eup %3754 }
 0x9e1   : > { %v2266_v23 = vsel %vm2083_vm6, %v3755_v22, 0.0 }
 0x9e2   : > { %2267 = vadd.xlane.f32.xlu1 %v2266_v23 }
 0x9f3   : > { %2358 = vrot.lane.b32.xlu1 %v4595_v60, %s4025_s8  ;;  %s5029_s8 = smov 16  }
 0x9f7   : > { %2453 = vrot.lane.b32.xlu1 %v4584_v57, %s4022_s0 }
 0xa03   : > { %v2092_v24 = vpop.xlane.xlu0 %2091 }
 0xa04   : > { %3756 = vrcp.f32 %v2092_v24 }
 0xa07   : > { %v2274_v28 = vpop.permute.xlu0 %2273 }
 0xa0b   : > { %v2361_v33 = vpop.permute.xlu0 %2360 }
 0xa11   : > { %v3757_v25 = vpop.eup %3756 }
 0xa12   : > { %v2094_v26 = vmul.f32 %v3757_v25, %v3753_v15  ;;  %v1999_v15 = vld [vmem:[%s5030_s11] sm:$0xff] }
 0xa14   : > { %2095 = vst.msk [vmem:[%s4641_s30] sm:$0xff] %vm2083_vm6, %v2094_v26  ;;  %3553 = vmatmul.mubr.msk.f32.vlgmr.msra.gmra.mxu0 %vm2083_vm6, %v2094_v26 }
 0xa15   : > { %3563 = vmatpush3.msk.msra.mxu0 %vm2104_vm7, %v2276_v27  ;;  %3566 = vmatprep.mubr.msk.f32.mxu0 %vm4019_vm0, %v4018_v0 }
 0xa16   : > { %3564 = vmatprep.subr.mxu0 %v4018_v0 }
 0xa17   : > { %3565 = vmatpush3.msra.mxu0 %v2274_v28 }
 0xa18   : > { %3569 = vmatprep.subr.mxu0 %v4018_v0 }
 0xa6b   : > { %v2268_v30 = vpop.xlane.xlu1 %2267 }
 0xa6c   : > { %3758 = vrcp.f32 %v2268_v30 }
 0xa6f   : > { %v2359_v34 = vpop.permute.xlu1 %2358 }
 0xa73   : > { %v2454_v46 = vpop.permute.xlu1 %2453 }
 0xa79   : > { %v3759_v31 = vpop.eup %3758 }
 0xa7a   : > { %v2270_v32 = vmul.f32 %v3759_v31, %v3755_v22  ;;  %v2831_v31 = vld [vmem:[#allocation9 + $0x18] sm:$0xff] }
 0xa7c   : > { %3339 = vst.msk [vmem:[%s4641_s30 + $0x8] sm:$0xff] %vm2083_vm6, %v2270_v32  ;;  %3567 = vmatmul.mubr.msk.f32.vlgmr.msra.gmra.mxu0 %vm2083_vm6, %v2270_v32  ;;  %v2830_v32 = vld [vmem:[#allocation9 + $0x10] sm:$0xff] }
 0xa7d   : > { %3570 = vmatpush3.xpose.msk.msra.mxu0 %vm1028_vm2, %v2363_v29  ;;  %3573 = vmatprep.mubr.msk.f32.mxu0 %vm4019_vm0, %v4018_v0 }
 0xa7e   : > { %3571 = vmatprep.subr.mxu0 %v4018_v0 }
 0xa81   : > { %3572 = vmatpush3.xpose.msk.msra.mxu0 %vm1028_vm2, %v2361_v33  ;;  %v2829_v33 = vld [vmem:[#allocation9 + $0x8] sm:$0xff] }
 0xa82   : > { %3590 = vmatprep.subr.mxu0 %v4018_v0 }
 0xa84   : > { %3574 = vmatmul.mubr.msk.f32.vlgmr.msra.gmra.mxu0 %vm1028_vm2, %v2359_v34  ;;  %v2920_v34 = vld [vmem:[%s5033_s5 + $0x38] sm:$0xff] }
 0xa85   : > { %3594 = vmatprep.mubr.msk.f32.mxu0 %vm4019_vm0, %v4018_v0 }
 0xad4   : > { %v2173_v35 = vpop.f32.mrf.mxu0 }
 0xad5   : > { %2177 = vst.msk [vmem:[#allocation2] sm:$0xff] %vm1028_vm2, %v2173_v35  ;;  %v2919_v35 = vld [vmem:[%s5033_s5 + $0x30] sm:$0xff] }
 0xad6   : > { %v3554_v5 = vpop.f32.mrf.mxu0 }
 0xad7   : > { %v2918_v5 = vld [vmem:[%s5033_s5 + $0x28] sm:$0xff] }
 0xb3c   : > { %v2349_v36 = vpop.f32.mrf.mxu0 }
 0xb3e   : > { %v3568_v37 = vpop.f32.mrf.mxu0 }
 0xb3f   : > { %v2916_v37 = vld [vmem:[%s5033_s5 + $0x18] sm:$0xff] }
 0xb44   : > { %v2436_v38 = vpop.f32.mrf.mxu0 }
 0xb45   : > { %v2437_v39 = vadd.f32 %v2436_v38, %v4612_v2 }
 0xb46   : > { %v3575_v40 = vpop.f32.mrf.mxu0 }
 0xb47   : > { %v2440_v41 = vsel %vm2083_vm6, %v2437_v39, -inf }
 0xb48   : > { %2441 = vmax.xlane.f32.xlu0 %v2440_v41 }
 0xb5e   : > { %2455 = vrot.lane.b32.xlu0 %v4578_v55, %s4022_s0  ;;  %s5027_s0 = smov 72  }
 0xb62   : > { %2542 = vrot.lane.b32.xlu0 %v4578_v55, %s5026_s10 }
 0xb66   : > { %2538 = vrot.lane.b32.xlu0 %v4595_v60, %s5026_s10 }
 0xbd1   : > { %v2442_v42 = vpop.xlane.xlu0 %2441 }
 0xbd2   : > { %v2443_v43 = vsub.f32 %v2437_v39, %v2442_v42 }
 0xbd4   : > { %v2444_v44 = vmul.f32 1.442695, %v2443_v43 }
 0xbd5   : > { %v2456_v45 = vpop.permute.xlu0 %2455 }
 0xbd6   : > { %3760 = vpow2.f32 %v2444_v44  ;;  %3577 = vmatpush3.msk.msra.mxu1 %vm2104_vm7, %v2456_v45  ;;  %v3357_v44 = vld [vmem:[%s5035_s20] ss:$0 sm:$0xff]  ;;  %s5038_s20 = sld [smem:[#allocation24_spill]] }
 0xbd7   : > { %3578 = vmatprep.subr.mxu1 %v4018_v0 }
 0xbd8   : > { %3579 = vmatpush3.msra.mxu1 %v2454_v46 }
 0xbd9   : > { %3583 = vmatprep.subr.mxu1 %v4018_v0  ;;  %v2543_v53 = vpop.permute.xlu0 %2542 }
 0xbdc   : > { %p5041_p1 = scmp.ne.s32.totalorder %s5038_s20, 0 }
 0xbdd   : > { %v2539_v56 = vpop.permute.xlu0 %2538 }
 0xbe3   : > { %v3761_v47 = vpop.eup %3760 }
 0xbe4   : > { %v2446_v48 = vsel %vm2083_vm6, %v3761_v47, 0.0 }
 0xbe5   : > { %2447 = vadd.xlane.f32.xlu1 %v2446_v48  ;;  %v2914_v48 = vld [vmem:[%s5033_s5 + $0x8] sm:$0xff] }
 0xbf6   : > { %2540 = vrot.lane.b32.xlu1 %v4584_v57, %s5026_s10  ;;  %s5032_s10 = sld [smem:[#allocation39_spill]] }
 0xbfc   : > { %v3354_v20 = vld [vmem:[%s5032_s10] ss:$0 sm:$0xff]  ;;  %s5034_s10 = sld [smem:[#allocation40_spill]] }
 0xc02   : > { %v3356_v42 = vld [vmem:[%s5034_s10] ss:$0 sm:$0xff]  ;;  %s4034_s10 = smov [#allocation12]  }
 0xc6e   : > { %v2448_v49 = vpop.xlane.xlu1 %2447 }
 0xc6f   : > { %3762 = vrcp.f32 %v2448_v49  ;;  %v2913_v49 = vld [vmem:[%s5033_s5] sm:$0xff] }
 0xc72   : > { %v2541_v54 = vpop.permute.xlu1 %2540 }
 0xc7c   : > { %v3763_v50 = vpop.eup %3762 }
 0xc7d   : > { %v2450_v51 = vmul.f32 %v3763_v50, %v3761_v47  ;;  %v2915_v47 = vld [vmem:[%s5033_s5 + $0x10] sm:$0xff]  ;;  %v3358_v50 = vld [vmem:[%s5036_s26] ss:$0 sm:$0xff]  ;;  %s3882_s26 = scalar_lea.vmem %s4798_s2, 512 }
 0xc7e   : > { %p3883_p13 = scmp.ne.s32.totalorder %s4798_s2, %s3882_s26 }
 0xc7f   : > { %3345 = vst.msk [vmem:[%s4641_s30 + $0x10] sm:$0xff] %vm2083_vm6, %v2450_v51  ;;  %3581 = vmatmul.mubr.msk.f32.vlgmr.msra.gmra.mxu1 %vm2083_vm6, %v2450_v51 }
 0xc80   : > { %3584 = vmatpush3.xpose.msk.msra.mxu1 %vm1028_vm2, %v2543_v53  ;;  %3587 = vmatprep.mubr.msk.f32.mxu1 %vm4019_vm0, %v4018_v0  ;;  %p3884_p5 = pnand %p3883_p13, %p5041_p1 }
 0xc81   : > { %3585 = vmatprep.subr.mxu1 %v4018_v0 }
 0xc82   : > { %p3885_p0 = pneg %p3884_p5 }
 0xc84   : > { %3586 = vmatpush3.xpose.msk.msra.mxu1 %vm1028_vm2, %v2541_v54 }
 0xc85   : > { %3608 = vmatprep.subr.mxu1 %v4018_v0 }
 0xc87   : > { %3588 = vmatmul.mubr.msk.f32.vlgmr.msra.gmra.mxu1 %vm1028_vm2, %v2539_v56 }
 0xc88   : > { %3616 = vmatprep.mubr.msk.f32.mxu1 %vm4019_vm0, %v4018_v0  ;;  %3609 = vmatpush3.msra.mxu1 %v2831_v31 }
 0xc89   : > { %3610 = vmatprep.subr.mxu1 %v4018_v0 }
 0xc8a   : > { %3611 = vmatpush3.msra.mxu1 %v2830_v32 }
 0xc8b   : > { %3612 = vmatprep.subr.mxu1 %v4018_v0 }
 0xc8c   : > { %3613 = vmatpush3.msra.mxu1 %v2829_v33 }
 0xc8d   : > { %3614 = vmatprep.subr.mxu1 %v4018_v0 }
 0xd3f   : > { %v2529_v58 = vpop.f32.mrf.mxu1 }
 0xd41   : > { %v3582_v59 = vpop.f32.mrf.mxu1 }
 0xd47   : > { %v2616_v60 = vpop.f32.mrf.mxu1 }
 0xd48   : > { %v2617_v61 = vadd.f32 %v2616_v60, %v4612_v2 }
 0xd49   : > { %v3589_v62 = vpop.f32.mrf.mxu1 }
 0xd4a   : > { %v2620_v63 = vsel %vm2083_vm6, %v2617_v61, -inf }
 0xd4b   : > { %2621 = vmax.xlane.f32.xlu1 %v2620_v63 }
 0xd5c   : > { %2633 = vrot.lane.b32.xlu1 %v4584_v57, %s5027_s0 }
 0xd60   : > { %2354 = vrot.lane.b32.xlu1 %v2349_v36, %s5028_s19  ;;  %v2917_v36 = vld [vmem:[%s5033_s5 + $0x20] sm:$0xff] }
 0xdd4   : > { %v2622_v1 = vpop.xlane.xlu1 %2621 }
 0xdd5   : > { %v2623_v3 = vsub.f32 %v2617_v61, %v2622_v1 }
 0xdd7   : > { %v2624_v4 = vmul.f32 1.442695, %v2623_v3 }
 0xdd8   : > { %v2634_v6 = vpop.permute.xlu1 %2633 }
 0xdd9   : > { %3764 = vpow2.f32 %v2624_v4 }
 0xddc   : > { %v2355_v7 = vpop.permute.xlu1 %2354 }
 0xddd   : > { %2357 = vst.msk [vmem:[#allocation2] sm:$0xff] %vm1363_vm3, %v2355_v7 }
 0xde6   : > { %v3765_v8 = vpop.eup %3764 }
 0xde7   : > { %v2626_v2 = vsel %vm2083_vm6, %v3765_v8, 0.0 }
 0xde8   : > { %2627 = vadd.xlane.f32.xlu0 %v2626_v2 }
 0xdfe   : > { %2635 = vrot.lane.b32.xlu0 %v4578_v55, %s5027_s0  ;;  %v2002_v55 = vld [vmem:[%s5030_s11 + $0x18] sm:$0xff]  ;;  %s3886_s0 = sshll.u32 %s4034_s10, 4  ;;  %s3887_s0 = int_to_ptr.vmem [resolvable:$false] %s3886_s0 }
 0xdff   : > { %p3889_p9 = scmp.lt.s32.totalorder %s4798_s2, %s3887_s0 }
 0xe02   : > { %2534 = vrot.lane.b32.xlu0 %v2529_v58, %s5029_s8  ;;  %s5037_s8 = sld [smem:[#allocation44_spill]] }
 0xe71   : > { %v2628_v57 = vpop.xlane.xlu0 %2627 }
 0xe72   : > { %3766 = vrcp.f32 %v2628_v57 }
 0xe75   : > { %v2636_v9 = vpop.permute.xlu0 %2635 }
 0xe76   : > { %3591 = vmatpush3.msk.msra.mxu0 %vm2104_vm7, %v2636_v9 }
 0xe77   : > { %3592 = vmatprep.subr.mxu0 %v4018_v0 }
 0xe78   : > { %3593 = vmatpush3.msra.mxu0 %v2634_v6 }
 0xe79   : > { %v2535_v10 = vpop.permute.xlu0 %2534  ;;  %3597 = vmatprep.subr.mxu0 %v4018_v0 }
 0xe7a   : > { %2537 = vst.msk [vmem:[#allocation2] sm:$0xff] %vm1536_vm4, %v2535_v10 }
 0xe7f   : > { %v3767_v11 = vpop.eup %3766 }
 0xe80   : > { %v2630_v12 = vmul.f32 %v3767_v11, %v3765_v8 }
 0xe82   : > { %3351 = vst.msk [vmem:[%s4641_s30 + $0x18] sm:$0xff] %vm2083_vm6, %v2630_v12  ;;  %3595 = vmatmul.mubr.msk.f32.vlgmr.msra.gmra.mxu0 %vm2083_vm6, %v2630_v12 }
 0xe83   : > { %3605 = vmatprep.mubr.msk.f32.mxu0 %vm4019_vm0, %v4018_v0  ;;  %3598 = vmatpush3.msra.mxu0 %v2002_v55 }
 0xe84   : > { %3599 = vmatprep.subr.mxu0 %v4018_v0 }
 0xe85   : > { %3600 = vmatpush3.msra.mxu0 %v2001_v13 }
 0xe86   : > { %3601 = vmatprep.subr.mxu0 %v4018_v0 }
 0xe87   : > { %3602 = vmatpush3.msra.mxu0 %v2000_v14 }
 0xe88   : > { %3603 = vmatprep.subr.mxu0 %v4018_v0 }
 0xe89   : > { %3604 = vmatpush3.msra.mxu0 %v1999_v15 }
 0xe8a   : > { %3619 = vmatprep.subr.mxu0 %v4018_v0 }
 0xf42   : > { %v2709_v16 = vpop.f32.mrf.mxu0 }
 0xf43   : > { %2714 = vrot.lane.b32.xlu1 %v2709_v16, %s5031_s17  ;;  %s5040_s17 = sand.u32 1, %s4256_s22  }
 0xf44   : > { %v3596_v17 = vpop.f32.mrf.mxu0  ;;  %s4802_s28 = scalar_lea.sflag [#allocation13], %s5040_s17 }
 0xfb5   : > { %v2715_v18 = vpop.permute.xlu1 %2714 }
 0xfb6   : > { %2717 = vst.msk [vmem:[#allocation2] sm:$0xff] %vm1709_vm5, %v2715_v18 }
 0xfbd   : > { %v2718_v19 = vld [vmem:[#allocation2] sm:$0xff] }
 0xfbe   : > { %3606 = vmatmul.mubr.msk.f32.vlgmr.msra.gmra.mxu0 %vm945_vm1, %v2718_v19 }
 0xfbf   : > { %3635 = vmatprep.mubr.msk.f32.mxu0 %vm4019_vm0, %v4018_v0  ;;  %3620 = vmatpush3.msra.mxu0 %v2920_v34 }
 0xfc0   : > { %3621 = vmatprep.subr.mxu0 %v4018_v0 }
 0xfc1   : > { %3622 = vmatpush3.msra.mxu0 %v2919_v35 }
 0xfc2   : > { %3623 = vmatprep.subr.mxu0 %v4018_v0 }
 0xfc3   : > { %3624 = vmatpush3.msra.mxu0 %v2918_v5 }
 0xfc4   : > { %3625 = vmatprep.subr.mxu0 %v4018_v0 }
 0xfc5   : > { %3626 = vmatpush3.msra.mxu0 %v2917_v36 }
 0xfc6   : > { %3627 = vmatprep.subr.mxu0 %v4018_v0 }
 0xfc7   : > { %3628 = vmatpush3.msra.mxu0 %v2916_v37 }
 0xfc8   : > { %3629 = vmatprep.subr.mxu0 %v4018_v0 }
 0xfc9   : > { %3630 = vmatpush3.msra.mxu0 %v2915_v47 }
 0xfca   : > { %3631 = vmatprep.subr.mxu0 %v4018_v0 }
 0xfcb   : > { %3632 = vmatpush3.msra.mxu0 %v2914_v48 }
 0xfcc   : > { %3633 = vmatprep.subr.mxu0 %v4018_v0  ;;  %v3360_v0 = vld [vmem:[%s5037_s8] ss:$0 sm:$0xff]  ;;  %s3888_s8 = scalar_lea.vmem %s3887_s0, 1024 }
 0xfcd   : > { %3634 = vmatpush3.msra.mxu0 %v2913_v49  ;;  %p3890_p10 = scmp.lt.s32.totalorder %s3888_s8, %s3882_s26 }
 0xfcf   : > { %p3891_p3 = por %p3890_p10, %p3889_p9 }
 0xfd1   : > { %p3892_p4 = pnand %p3891_p3, %p3885_p0 }
0x107e   : > { %v2794_v21 = vpop.f32.mrf.mxu0 }
0x107f   : > { %v2795_v22 = vadd.f32 %v3354_v20, %v2794_v21 }
0x1080   : > { %v3607_v23 = vpop.f32.mrf.mxu0 }
0x1081   : > { %v2798_v24 = vadd.f32 %v2795_v22, %v4569_v52  ;;  %v2828_v52 = vld [vmem:[#allocation9] sm:$0xff] }
0x1082   : > { %3615 = vmatpush3.msra.mxu1 %v2828_v52 }
0x1083   : > { %v2801_v25 = vsel %vm945_vm1, %v2798_v24, 0.0 }
0x1084   : > { %2802 = vadd.xlane.f32.xlu0 %v2801_v25 }
0x110d   : > { %v2803_v26 = vpop.xlane.xlu0 %2802 }
0x110e   : > { %v2804_v27 = vmul.f32 0.03125, %v2803_v26 }
0x1110   : > { %v2805_v28 = vsub.f32 %v2798_v24, %v2804_v27 }
0x1112   : > { %v2806_v29 = vmul.f32 %v2805_v28, %v2805_v28 }
0x1114   : > { %v2807_v30 = vsel %vm945_vm1, %v2806_v29, 0.0 }
0x1115   : > { %2808 = vadd.xlane.f32.xlu1 %v2807_v30 }
0x119e   : > { %v2809_v38 = vpop.xlane.xlu1 %2808 }
0x119f   : > { %v2810_v39 = vmul.f32 0.03125, %v2809_v38 }
0x11a1   : > { %v2811_v40 = vadd.f32 1e-05, %v2810_v39 }
0x11a3   : > { %3768 = vrsqrt.f32 %v2811_v40 }
0x11b0   : > { %v3769_v41 = vpop.eup %3768 }
0x11b1   : > { %v2813_v43 = vmul.f32 %v3769_v41, %v2805_v28 }
0x11b3   : > { %v2820_v45 = vmul.f32 %v3356_v42, %v2813_v43 }
0x11b5   : > { %v2827_v46 = vadd.f32 %v3357_v44, %v2820_v45 }
0x11b7   : > { %3617 = vmatmul.mubr.msk.f32.vlgmr.msra.gmra.mxu1 %vm945_vm1, %v2827_v46 }
0x1277   : > { %v2908_v51 = vpop.f32.mrf.mxu1 }
0x1278   : > { %v2909_v53 = vadd.f32 %v3358_v50, %v2908_v51 }
0x1279   : > { %v3618_v54 = vpop.f32.mrf.mxu1 }
0x127a   : > { %v2912_v56 = vmax.f32 %v2909_v53, 0.0 }
0x127c   : > { %3636 = vmatmul.mubr.msk.f32.vlgmr.msra.gmra.mxu0 %vm2928_vm8, %v2912_v56 }
0x133c   : > { %v2998_v58 = vpop.f32.mrf.mxu0 }
0x133d   : > { %v2999_v59 = vadd.f32 %v3360_v0, %v2998_v58 }
0x133e   : > { %v3637_v60 = vpop.f32.mrf.mxu0 }
0x133f   : > { %v3002_v61 = vadd.f32 %v2999_v59, %v2827_v46 }
0x1341   : > { %v3005_v62 = vsel %vm945_vm1, %v3002_v61, 0.0 }
0x1342   : > { %3006 = vadd.xlane.f32.xlu0 %v3005_v62 }
0x13cb   : > { %v3007_v63 = vpop.xlane.xlu0 %3006 }
0x13cc   : > { %v3008_v1 = vmul.f32 0.03125, %v3007_v63 }
0x13ce   : > { %v4784_v3 = vsub.f32 %v3002_v61, %v3008_v1 }
0x13d0   : > { %v3010_v4 = vmul.f32 %v4784_v3, %v4784_v3 }
0x13d2   : > { %v3011_v6 = vsel %vm945_vm1, %v3010_v4, 0.0 }
0x13d3   : > { %3012 = vadd.xlane.f32.xlu0 %v3011_v6 }
0x13d4   : > { %3895 = shalt.err (!%p3892_p4)
}
0x13d5   : > { %s3896_s16 = scalar_lea.hbm %s4795_s15, 512  ;;  %s3900_s17 = scalar_lea.hbm %s5039_s21, 1024 }
0x13d6   : > { %p3897_p11 = scmp.ne.s32.totalorder %s4795_s15, %s3896_s16  ;;  %p3901_p6 = scmp.lt.s32.totalorder %s4795_s15, %s5039_s21 }
0x13d7   : > { %p3902_p12 = scmp.lt.s32.totalorder %s3900_s17, %s3896_s16 }
0x13d8   : > { %p3898_p2 = pnand %p3897_p11, %p5041_p1 }
0x13d9   : > { %p3903_p7 = por %p3902_p12, %p3901_p6 }
0x13da   : > { %p3899_p8 = pneg %p3898_p2 }
0x13dc   : > { %p3904_p13 = pnand %p3903_p7, %p3899_p8 }
0x13de   : > { %3907 = shalt.err (!%p3904_p13)
}
0x13df   : > { %s4035_s26 = smov 128   ;;  %s5042_s0 = sshll.u32 %s4256_s22, 9 }
0x13e0   : > { %3649 = dma.vmem_to_hbm [thread:$0]  (%p5041_p1), %s4798_s2, 512, %s4795_s15, %s4802_s28, %s4035_s26, %s4035_s26, %s5028_s19  }
0x13e1   : > { %s5043_s16 = sld [smem:[#allocation49_spill]]  ;;  %s3086_s29 = sshll.u32 %s4641_s30, 4  ;;  %s3087_s29 = int_to_ptr.vmem [resolvable:$true] %s3086_s29 }
0x13e2   : > { %s3908_s17 = scalar_lea.vmem %s3087_s29, 512  ;;  %s4036_s10 = smov [#allocation14]  }
0x13e3   : > { %p3909_p5 = scmp.ne.s32.totalorder %s3087_s29, %s3908_s17  ;;  %s3912_s1 = sshll.u32 %s4036_s10, 4  ;;  %s3913_s1 = int_to_ptr.vmem [resolvable:$false] %s3912_s1 }
0x13e4   : > { %s3914_s5 = scalar_lea.vmem %s3913_s1, 1024  ;;  %p3915_p10 = scmp.lt.s32.totalorder %s3087_s29, %s3913_s1 }
0x13e5   : > { %p3910_p0 = pnand %p3909_p5, %p5041_p1  ;;  %p3916_p3 = scmp.lt.s32.totalorder %s3914_s5, %s3908_s17 }
0x13e7   : > { %s4833_s27 = scalar_lea.hbm %s5043_s16, %s5042_s0  ;;  %p3911_p9 = pneg %p3910_p0 }
0x13e8   : > { %p3917_p4 = por %p3916_p3, %p3915_p10 }
0x13ea   : > { %p3918_p11 = pnand %p3917_p4, %p3911_p9 }
0x13ec   : > { %3921 = shalt.err (!%p3918_p11)
}
0x13ed   : > { %s3922_s30 = scalar_lea.hbm %s4833_s27, 512  ;;  %s3926_s0 = scalar_lea.hbm %s5043_s16, 1024 }
0x13ee   : > { %p3923_p2 = scmp.ne.s32.totalorder %s4833_s27, %s3922_s30  ;;  %p3927_p12 = scmp.lt.s32.totalorder %s4833_s27, %s5043_s16 }
0x13ef   : > { %p3928_p7 = scmp.lt.s32.totalorder %s3926_s0, %s3922_s30 }
0x13f0   : > { %p3924_p8 = pnand %p3923_p2, %p5041_p1 }
0x13f1   : > { %p3929_p13 = por %p3928_p7, %p3927_p12 }
0x13f2   : > { %p3925_p6 = pneg %p3924_p8 }
0x13f4   : > { %p3930_p5 = pnand %p3929_p13, %p3925_p6 }
0x13f6   : > { %3933 = shalt.err (!%p3930_p5)
}
0x13f7   : > { %3650 = dma.vmem_to_hbm [thread:$0]  (%p5041_p1), %s3087_s29, 512, %s4833_s27, %s4802_s28, %s4035_s26, %s4035_s26, %s5028_s19  }
0x13f8   : > { %s5044_s17 = sld [smem:[#allocation45_spill]]  ;;  %s3367_s2 = sshll.u32 %s4256_s22, 7 }
0x13f9   : > { %s5045_s15 = sld [smem:[#allocation46_spill]]  ;;  %s911_s0 = scalar_lea.vmem [#allocation11], %s4364_s6 }
0x13fa   : > { %s3057_s19 = sshll.u32 %s911_s0, 4  ;;  %s5046_s27 = sld [smem:[#allocation47_spill]]  ;;  %s3058_s19 = int_to_ptr.vmem [resolvable:$true] %s3057_s19 }
0x13fb   : > { %s3034_s8 = scalar_lea.sflag [#allocation5], %s4361_s23  ;;  %s3934_s1 = scalar_lea.vmem %s3058_s19, 128 }
0x13fc   : > { %p3935_p0 = scmp.ne.s32.totalorder %s3058_s19, %s3934_s1  ;;  %s4037_s5 = smov [#allocation11]  }
0x13fe   : > { %v3362_v9 = vld [vmem:[%s5044_s17] ss:$0 sm:$0xff]  ;;  %p3936_p9 = pnand %p3935_p0, %p5041_p1  ;;  %s3938_s17 = sshll.u32 %s4037_s5, 4  ;;  %s3939_s17 = int_to_ptr.vmem [resolvable:$false] %s3938_s17 }
0x13ff   : > { %v3363_v11 = vld [vmem:[%s5045_s15] ss:$0 sm:$0xff]  ;;  %s3940_s22 = scalar_lea.vmem %s3939_s17, 256  ;;  %p3941_p3 = scmp.lt.s32.totalorder %s3058_s19, %s3939_s17 }
0x1400   : > { %s5047_s29 = smov %s5046_s27  ;;  %s3055_s4 = scalar_lea.hbm %s5046_s27, %s3367_s2 }
0x1401   : > { %p3937_p10 = pneg %p3936_p9  ;;  %p3942_p4 = scmp.lt.s32.totalorder %s3940_s22, %s3934_s1 }
0x1403   : > { %p3943_p11 = por %p3942_p4, %p3941_p3 }
0x1405   : > { %p3944_p2 = pnand %p3943_p11, %p3937_p10 }
0x145c   : > { %v3013_v7 = vpop.xlane.xlu0 %3012 }
0x145d   : > { %v3014_v8 = vmul.f32 0.03125, %v3013_v7 }
0x145f   : > { %v3015_v2 = vadd.f32 1e-05, %v3014_v8 }
0x1461   : > { %3770 = vrsqrt.f32 %v3015_v2 }
0x146e   : > { %v3771_v57 = vpop.eup %3770 }
0x146f   : > { %v3017_v10 = vmul.f32 %v3771_v57, %v4784_v3 }
0x1471   : > { %v3024_v12 = vmul.f32 %v3362_v9, %v3017_v10 }
0x1473   : > { %v3031_v55 = vadd.f32 %v3363_v11, %v3024_v12 }
0x1475   : > { %3032 = vst.msk [vmem:[%s911_s0] sm:$0xff] %vm945_vm1, %v3031_v55 }
0x1476   : > { %3947 = shalt.err (!%p3944_p2)
}
0x1477   : > { %s3948_s6 = scalar_lea.hbm %s3055_s4, 128  ;;  %s3952_s30 = scalar_lea.hbm %s5047_s29, 256 }
0x1478   : > { %p3949_p8 = scmp.ne.s32.totalorder %s3055_s4, %s3948_s6  ;;  %p3953_p7 = scmp.lt.s32.totalorder %s3055_s4, %s5047_s29 }
0x1479   : > { %p3954_p13 = scmp.lt.s32.totalorder %s3952_s30, %s3948_s6 }
0x147a   : > { %p3950_p6 = pnand %p3949_p8, %p5041_p1 }
0x147b   : > { %p3955_p5 = por %p3954_p13, %p3953_p7 }
0x147c   : > { %p3951_p12 = pneg %p3950_p6 }
0x147e   : > { %p3956_p0 = pnand %p3955_p5, %p3951_p12 }
0x1480   : > { %3959 = shalt.err (!%p3956_p0)
}
0x1481   : > { %3648 = dma.vmem_to_hbm [thread:$0]  (%p5041_p1), %s3058_s19, 128, %s3055_s4, %s3034_s8  }
0x1482 PF: > { %s5048_s0 = sld [smem:[#allocation20_spill]] }
0x1483   : > { %s5049_s28 = sld [smem:[#allocation25_spill]] }
0x1484   : > { %s5050_s26 = sld [smem:[#allocation21_spill]] }
0x1488   : > { %s3101_s27 = sand.u32 1, %s5048_s0  }
0x1489   : > { %p5051_p9 = scmp.ne.s32.totalorder %s5049_s28, 0  ;;  %s3102_s1 = scalar_lea.sflag [#allocation5], %s3101_s27 }
0x148a   : > { %p5052_p10 = scmp.ge.s32.totalorder %s5050_s26, 2 }
0x148c   : > { %p3669_p3 = pnand %p5052_p10, %p5051_p9 }
0x148e   : > { %p3670_p4 = pneg %p3669_p3 }
0x1490   : > { %3989 = dma.done.wait (%p3670_p4), %s3102_s1, 128  }
0x1491   : > { %3991 = vsyncadd (%p3670_p4), %s3102_s1, 4294967168  ;;  %s5053_s5 = sadd.s32 4294967294, %s5050_s26  }
0x1492   : > { %s3110_s17 = sand.u32 1, %s5053_s5  }
0x1493   : > { %s3111_s22 = scalar_lea.sflag [#allocation13], %s3110_s17 }
0x1494   : > { %3993 = dma.done.wait (%p3670_p4), %s3111_s22, 1024  }
0x1495   : > { %3995 = vsyncadd (%p3670_p4), %s3111_s22, 4294966272  ;;  %s5054_s28 = sld [smem:[#allocation22_spill]]  ;;  %s5056_s27 = smov %s4002_s3 }
0x1496   : > { %s5055_s20 = sld [smem:[#allocation23_spill]]  ;;  %s5057_s3 = smov %s4006_s7 }
0x149b   : > { %p47_p1 = scmp.ge.s32.totalorder %s5054_s28, 4  }
0x149c   : > { %s5058_s7 = smov %s5055_s20 }
0x149d   :  { %49 = sbr.rel (!%p47_p1) target bundleno = 35 (0x23), region = 230 }
0x14a2   :  { %3125 = vsyncpa [#allocation4], 1 }
0x14a3   :  { %3127 = vsyncpa [#allocation4 + $0x1], 1 }
0x14a4   :  { %3128 = vsyncpa [#allocation7], 1 }
0x14a5   :  { %3130 = vsyncpa [#allocation7 + $0x1], 1 }
0x14a6   :  { %3131 = vsyncpa [#allocation10], 1 }
0x14a7   :  { %3132 = vsyncpa [#allocation5], 1 }
0x14a8   :  { %3134 = vsyncpa [#allocation5 + $0x1], 1 }
0x14a9   :  { %3135 = vsyncpa [#allocation13], 1 }
0x14aa   :  { %3137 = vsyncpa [#allocation13 + $0x1], 1 }

</bundles_post_ra>
